<compile_context>
chip_gen: v7x
topology: tpu7x:2x2x1
jax: 0.10.0
libtpu: 0.0.40
codegen_flags: <defaults>
</compile_context>

<pallas_src>
import jax
import jax.numpy as jnp
from jax.experimental import pallas as pl
from jax.experimental.pallas import tpu as pltpu

# ---------------------------------------------------------------------------
# Model config (NUM_FILTERS[0] == sum(NUM_UPSAMPLE_FILTERS), as the module requires)
# ---------------------------------------------------------------------------
LAYER_NUMS = (1, 1)
NUM_FILTERS = (64, 32)
NUM_UPSAMPLE_FILTERS = (32, 32)
UPSAMPLE_STRIDES = (1, 2)
BN_EPS = 1e-3


# ---------------------------------------------------------------------------
# In-kernel helper: one 3x3 conv (+folded BN shift + ReLU) as a single K-packed matmul
# ---------------------------------------------------------------------------
def _conv3x3_im2col(pad_ref, patch_ref, w, b, h, wd):
    """pad_ref: (h+2, wd+2, cin) f32 VMEM scratch holding the zero-padded input.
    patch_ref: (h*wd, 9*cin) bf16 VMEM scratch (im2col matrix).
    w: (9*cin, cout) bf16 (BN scale folded in), b: (1, cout) f32 shift.
    Returns (h*wd, cout) f32 post-ReLU."""
    cin = pad_ref.shape[-1]
    for kh in range(3):
        for kw in range(3):
            k = kh * 3 + kw
            win = pad_ref[kh:kh + h, kw:kw + wd, :].reshape(h * wd, cin)
            patch_ref[:, k * cin:(k + 1) * cin] = win.astype(patch_ref.dtype)
    y = jnp.dot(patch_ref[...], w, preferred_element_type=jnp.float32)
    return jnp.maximum(y + b, 0.0)


# ---------------------------------------------------------------------------
# Kernel A: blocks[1] (stack of 3x3 conv+BN+ReLU) + deblocks[1] deconv, fused
# ---------------------------------------------------------------------------
def _block1_deconv_kernel(x5_ref, b1_w_ref, b1_b_ref, de1_w_ref, de1_b_ref,
                          o_ref, p5_ref, patch_ref):
    _, h5, w5, c5 = x5_ref.shape
    # zero halo once; only the interior is rewritten between layers
    p5_ref[...] = jnp.zeros_like(p5_ref)
    p5_ref[1:1 + h5, 1:1 + w5, :] = x5_ref[0]

    n_layers = b1_w_ref.shape[0]
    y = None
    for l in range(n_layers):
        y = _conv3x3_im2col(p5_ref, patch_ref, b1_w_ref[l], b1_b_ref[l], h5, w5)
        if l + 1 < n_layers:
            p5_ref[1:1 + h5, 1:1 + w5, :] = y.reshape(h5, w5, c5)

    # ConvTranspose2d(k=2, s=2) + BN + ReLU: 4 taps packed on the lane dim
    yd = jnp.dot(y.astype(jnp.bfloat16), de1_w_ref[...],
                 preferred_element_type=jnp.float32)
    yd = jnp.maximum(yd + de1_b_ref[...], 0.0)          # (h5*w5, 4*cup)
    o_ref[0] = yd.reshape(h5, w5, de1_w_ref.shape[-1])  # lane-dense store


# ---------------------------------------------------------------------------
# Kernel B: deblocks[0] 1x1 conv + channel-concat (in VMEM) + blocks[0], fused
# ---------------------------------------------------------------------------
def _concat_block0_kernel(x4_ref, up1_ref, de0_w_ref, de0_b_ref,
                          b0_w_ref, b0_b_ref, o_ref, cat_ref, patch_ref):
    _, h4, w4, c4 = x4_ref.shape
    cup = de0_w_ref.shape[-1]
    cout = b0_w_ref.shape[-1]

    # deblocks[0]: ConvTranspose2d(k=1, s=1) == 1x1 conv, + BN + ReLU
    x4 = x4_ref[0].reshape(h4 * w4, c4).astype(jnp.bfloat16)
    up0 = jnp.dot(x4, de0_w_ref[...], preferred_element_type=jnp.float32)
    up0 = jnp.maximum(up0 + de0_b_ref[...], 0.0)

    # torch.cat(ups, dim=1): assembled directly in the padded VMEM scratch
    cat_ref[...] = jnp.zeros_like(cat_ref)
    cat_ref[1:1 + h4, 1:1 + w4, 0:cup] = up0.reshape(h4, w4, cup)
    cat_ref[1:1 + h4, 1:1 + w4, cup:cup + up1_ref.shape[-1]] = up1_ref[0]

    # blocks[0]
    n_layers = b0_w_ref.shape[0]
    y = None
    for l in range(n_layers):
        y = _conv3x3_im2col(cat_ref, patch_ref, b0_w_ref[l], b0_b_ref[l], h4, w4)
        if l + 1 < n_layers:
            cat_ref[1:1 + h4, 1:1 + w4, :] = y.reshape(h4, w4, cout)
    o_ref[0] = y.reshape(h4, w4, cout)


# ---------------------------------------------------------------------------
# pallas_call wrappers (grid over batch, one image per step, megacore-parallel)
# ---------------------------------------------------------------------------
def _bcast_spec(shape):
    zeros = (0,) * len(shape)
    return pl.BlockSpec(shape, lambda i: zeros)


def block1_deconv(x5, b1_w, b1_b, de1_w, de1_b):
    n, h5, w5, c5 = x5.shape
    c_de = de1_w.shape[-1]  # 4 * num_upsample_filters[1]
    return pl.pallas_call(
        _block1_deconv_kernel,
        out_shape=jax.ShapeDtypeStruct((n, h5, w5, c_de), jnp.float32),
        grid=(n,),
        in_specs=[
            pl.BlockSpec((1, h5, w5, c5), lambda i: (i, 0, 0, 0)),
            _bcast_spec(b1_w.shape), _bcast_spec(b1_b.shape),
            _bcast_spec(de1_w.shape), _bcast_spec(de1_b.shape),
        ],
        out_specs=pl.BlockSpec((1, h5, w5, c_de), lambda i: (i, 0, 0, 0)),
        scratch_shapes=[
            pltpu.VMEM((h5 + 2, w5 + 2, c5), jnp.float32),    # padded activation
            pltpu.VMEM((h5 * w5, 9 * c5), jnp.bfloat16),      # im2col patch
        ],
        compiler_params=pltpu.CompilerParams(dimension_semantics=("parallel",)),
    )(x5, b1_w, b1_b, de1_w, de1_b)


def concat_block0(x4, up1, de0_w, de0_b, b0_w, b0_b):
    n, h4, w4, c4 = x4.shape
    cout = b0_w.shape[-1]
    return pl.pallas_call(
        _concat_block0_kernel,
        out_shape=jax.ShapeDtypeStruct((n, h4, w4, cout), jnp.float32),
        grid=(n,),
        in_specs=[
            pl.BlockSpec((1, h4, w4, c4), lambda i: (i, 0, 0, 0)),
            pl.BlockSpec((1, h4, w4, up1.shape[-1]), lambda i: (i, 0, 0, 0)),
            _bcast_spec(de0_w.shape), _bcast_spec(de0_b.shape),
            _bcast_spec(b0_w.shape), _bcast_spec(b0_b.shape),
        ],
        out_specs=pl.BlockSpec((1, h4, w4, cout), lambda i: (i, 0, 0, 0)),
        scratch_shapes=[
            pltpu.VMEM((h4 + 2, w4 + 2, cout), jnp.float32),  # padded concat/activation
            pltpu.VMEM((h4 * w4, 9 * cout), jnp.bfloat16),    # im2col patch
        ],
        compiler_params=pltpu.CompilerParams(dimension_semantics=("parallel",)),
    )(x4, up1, de0_w, de0_b, b0_w, b0_b)


# ---------------------------------------------------------------------------
# BaseBEVBackboneV1 forward (NHWC in / NHWC out)
# ---------------------------------------------------------------------------
def bev_backbone_v1_forward(x_conv4, x_conv5, params):
    de0_w, de0_b = params["de0"]
    de1_w, de1_b = params["de1"]
    b1_w, b1_b = params["block1"]
    b0_w, b0_b = params["block0"]
    n, h5, w5, _ = x_conv5.shape
    cup = de0_w.shape[-1]

    # blocks[1](x_conv5) + deblocks[1], fused; taps packed along lanes.
    yd = block1_deconv(x_conv5, b1_w, b1_b, de1_w, de1_b)        # (n, h5, w5, 4*cup)
    # 2x2 tap scatter to the upsampled grid (layout-only glue on the smallest tensor).
    up1 = (yd.reshape(n, h5, w5, 2, 2, cup)
             .transpose(0, 1, 3, 2, 4, 5)
             .reshape(n, 2 * h5, 2 * w5, cup))
    # deblocks[0](x_conv4) + torch.cat(ups, dim=1) + blocks[0], fused.
    return concat_block0(x_conv4, up1, de0_w, de0_b, b0_w, b0_b)


# ---------------------------------------------------------------------------
# Pure-JAX reference (same math & same bf16 rounding points, no Pallas)
# ---------------------------------------------------------------------------
def _ref_conv3x3(x_b16, w, b):
    n, h, wd, _ = x_b16.shape
    xp = jnp.pad(x_b16, ((0, 0), (1, 1), (1, 1), (0, 0)))
    patch = jnp.concatenate(
        [xp[:, kh:kh + h, kw:kw + wd, :] for kh in range(3) for kw in range(3)],
        axis=-1)
    y = jnp.einsum("nhwc,cd->nhwd", patch, w, preferred_element_type=jnp.float32)
    return jnp.maximum(y + b, 0.0)


def _ref_conv1x1(x_b16, w, b):
    y = jnp.einsum("nhwc,cd->nhwd", x_b16, w, preferred_element_type=jnp.float32)
    return jnp.maximum(y + b, 0.0)


def _ref_deconv2x2(x_b16, w, b):
    n, h, wd, _ = x_b16.shape
    cup = w.shape[-1] // 4
    y = jnp.einsum("nhwc,cd->nhwd", x_b16, w, preferred_element_type=jnp.float32)
    y = jnp.maximum(y + b, 0.0)
    return (y.reshape(n, h, wd, 2, 2, cup)
             .transpose(0, 1, 3, 2, 4, 5)
             .reshape(n, 2 * h, 2 * wd, cup))


def bev_backbone_v1_forward_ref(x_conv4, x_conv5, params):
    bf16 = jnp.bfloat16
    de0_w, de0_b = params["de0"]
    de1_w, de1_b = params["de1"]
    b1_w, b1_b = params["block1"]
    b0_w, b0_b = params["block0"]

    up0 = _ref_conv1x1(x_conv4.astype(bf16), de0_w, de0_b)       # deblocks[0](x_conv4)
    cur = x_conv5.astype(bf16)
    for l in range(b1_w.shape[0]):                               # blocks[1](x_conv5)
        cur = _ref_conv3x3(cur, b1_w[l], b1_b[l]).astype(bf16)
    up1 = _ref_deconv2x2(cur, de1_w, de1_b)                      # deblocks[1](x)
    cur = jnp.concatenate([up0, up1], axis=-1).astype(bf16)      # torch.cat(ups, dim=1)
    out = None
    for l in range(b0_w.shape[0]):                               # blocks[0](x)
        out = _ref_conv3x3(cur, b0_w[l], b0_b[l])
        cur = out.astype(bf16)
    return out


# ---------------------------------------------------------------------------
# Deterministic parameter init (eval-mode BN folded; scale folded into weights)
# ---------------------------------------------------------------------------
def _fold_bn(gamma, beta, mean, var, eps=BN_EPS):
    scale = gamma / jnp.sqrt(var + eps)
    shift = beta - mean * scale
    return scale, shift


def _init_bn(key, c):
    kg, kb, km, kv = jax.random.split(key, 4)
    gamma = jax.random.uniform(kg, (c,), jnp.float32, 0.5, 1.5)
    beta = 0.1 * jax.random.normal(kb, (c,), jnp.float32)
    mean = 0.1 * jax.random.normal(km, (c,), jnp.float32)
    var = jax.random.uniform(kv, (c,), jnp.float32, 0.5, 1.5)
    return _fold_bn(gamma, beta, mean, var)


def init_params(key):
    keys = iter(jax.random.split(key, 16))

    def conv3x3_block(n_layers, c):
        ws, bs = [], []
        for _ in range(n_layers):
            w = jax.random.normal(next(keys), (3, 3, c, c), jnp.float32) / ((9 * c) ** 0.5)
            scale, shift = _init_bn(next(keys), c)
            ws.append((w * scale).reshape(9 * c, c).astype(jnp.bfloat16))  # fold BN scale
            bs.append(shift.reshape(1, c))
        return jnp.stack(ws), jnp.stack(bs)

    b0_w, b0_b = conv3x3_block(1 + LAYER_NUMS[0], NUM_FILTERS[0])
    b1_w, b1_b = conv3x3_block(1 + LAYER_NUMS[1], NUM_FILTERS[1])

    # deblocks[0]: ConvTranspose2d(64->32, k=1, s=1) == 1x1 conv
    w = jax.random.normal(next(keys), (NUM_FILTERS[0], NUM_UPSAMPLE_FILTERS[0]),
                          jnp.float32) / (NUM_FILTERS[0] ** 0.5)
    scale, shift = _init_bn(next(keys), NUM_UPSAMPLE_FILTERS[0])
    de0_w = (w * scale).astype(jnp.bfloat16)
    de0_b = shift.reshape(1, NUM_UPSAMPLE_FILTERS[0])

    # deblocks[1]: ConvTranspose2d(32->32, k=2, s=2); 4 taps packed on the lane dim.
    # Weight kept in (kh, kw, cin, cout) layout; lane index = kh*2*cout + kw*cout + c.
    # (Importing real PyTorch (cin,cout,kh,kw) weights would need a permute here.)
    w = jax.random.normal(next(keys), (2, 2, NUM_FILTERS[1], NUM_UPSAMPLE_FILTERS[1]),
                          jnp.float32) / (NUM_FILTERS[1] ** 0.5)
    scale, shift = _init_bn(next(keys), NUM_UPSAMPLE_FILTERS[1])
    de1_w = ((w * scale).transpose(2, 0, 1, 3)
             .reshape(NUM_FILTERS[1], 4 * NUM_UPSAMPLE_FILTERS[1]).astype(jnp.bfloat16))
    de1_b = jnp.tile(shift, 4).reshape(1, 4 * NUM_UPSAMPLE_FILTERS[1])

    return dict(block0=(b0_w, b0_b), block1=(b1_w, b1_b),
                de0=(de0_w, de0_b), de1=(de1_w, de1_b))


# ---------------------------------------------------------------------------
if __name__ == "__main__":
    key = jax.random.PRNGKey(0)
    k_p, k_x4, k_x5 = jax.random.split(key, 3)

    N, H4, W4 = 2, 16, 16
    # Inputs in PyTorch NCHW convention.
    x_conv4_nchw = jax.random.normal(k_x4, (N, NUM_FILTERS[0], H4, W4), jnp.float32)
    x_conv5_nchw = jax.random.normal(k_x5, (N, NUM_FILTERS[1], H4 // 2, W4 // 2), jnp.float32)

    params = init_params(k_p)

    # NCHW -> NHWC for the kernels.
    x4 = jnp.transpose(x_conv4_nchw, (0, 2, 3, 1))
    x5 = jnp.transpose(x_conv5_nchw, (0, 2, 3, 1))

    out_nhwc = bev_backbone_v1_forward(x4, x5, params)
    spatial_features_2d = jnp.transpose(out_nhwc, (0, 3, 1, 2))   # back to NCHW
    jax.block_until_ready(spatial_features_2d)

    assert spatial_features_2d.shape == (N, sum(NUM_UPSAMPLE_FILTERS), H4, W4), \
        spatial_features_2d.shape

    ref = jnp.transpose(bev_backbone_v1_forward_ref(x4, x5, params), (0, 3, 1, 2))
    max_err = float(jnp.max(jnp.abs(spatial_features_2d - ref)))
    if not jnp.allclose(spatial_features_2d, ref, rtol=1e-2, atol=1e-2):
        raise AssertionError(f"Pallas result does not match JAX reference (max err {max_err})")

    print("KERNEL_OK")
</pallas_src>

<mosaic_0001>
module attributes {stable_mosaic.version = 11 : i64} {
  func.func @_block1_deconv_kernel(%arg0: i32, %arg1: memref<1x8x8x32xf32, #tpu.memory_space<vmem>>, %arg2: memref<2x288x32xbf16, #tpu.memory_space<vmem>>, %arg3: memref<2x1x32xf32, #tpu.memory_space<vmem>>, %arg4: memref<32x128xbf16, #tpu.memory_space<vmem>>, %arg5: memref<1x128xf32, #tpu.memory_space<vmem>>, %arg6: memref<1x8x8x128xf32, #tpu.memory_space<vmem>>, %arg7: memref<10x10x32xf32, #tpu.memory_space<vmem>>, %arg8: memref<64x288xbf16, #tpu.memory_space<vmem>>) attributes {dimension_semantics = [#tpu.dimension_semantics<parallel>], iteration_bounds = array<i64: 2>, scalar_prefetch = 0 : i64, scratch_operands = 2 : i64, tpu.core_type = #tpu.core_type<tc>, window_params = [{transform_indices = @transform_0, window_bounds = array<i64: 1, 8, 8, 32>}, {pipeline_mode = #tpu.pipeline_mode<synchronous>, transform_indices = @transform_1, window_bounds = array<i64: 2, 288, 32>}, {pipeline_mode = #tpu.pipeline_mode<synchronous>, transform_indices = @transform_2, window_bounds = array<i64: 2, 1, 32>}, {pipeline_mode = #tpu.pipeline_mode<synchronous>, transform_indices = @transform_3, window_bounds = array<i64: 32, 128>}, {pipeline_mode = #tpu.pipeline_mode<synchronous>, transform_indices = @transform_4, window_bounds = array<i64: 1, 128>}, {transform_indices = @transform_5, window_bounds = array<i64: 1, 8, 8, 128>}]} {
    %cst = arith.constant 0.000000e+00 : f32
    %0 = vector.broadcast %cst : f32 to vector<10x10x32xf32>
    %c0 = arith.constant 0 : index
    %c0_0 = arith.constant 0 : index
    %c0_1 = arith.constant 0 : index
    %1 = vector.load %arg7[%c0, %c0_0, %c0_1] : memref<10x10x32xf32, #tpu.memory_space<vmem>>, vector<10x10x32xf32>
    tpu.vector_store %arg7[%c0, %c0_0, %c0_1], %0 {strides = array<i32>} : memref<10x10x32xf32, #tpu.memory_space<vmem>>, vector<10x10x32xf32>,
    %c0_2 = arith.constant 0 : index
    %c0_3 = arith.constant 0 : index
    %c0_4 = arith.constant 0 : index
    %c0_5 = arith.constant 0 : index
    %2 = vector.load %arg1[%c0_2, %c0_3, %c0_4, %c0_5] : memref<1x8x8x32xf32, #tpu.memory_space<vmem>>, vector<1x8x8x32xf32>
    %3 = vector.shape_cast %2 : vector<1x8x8x32xf32> to vector<8x8x32xf32>
    %c1 = arith.constant 1 : index
    %c1_6 = arith.constant 1 : index
    %c0_7 = arith.constant 0 : index
    %4 = vector.load %arg7[%c1, %c1_6, %c0_7] : memref<10x10x32xf32, #tpu.memory_space<vmem>>, vector<8x8x32xf32>
    tpu.vector_store %arg7[%c1, %c1_6, %c0_7], %3 {strides = array<i32>} : memref<10x10x32xf32, #tpu.memory_space<vmem>>, vector<8x8x32xf32>,
    %c0_8 = arith.constant 0 : index
    %c0_9 = arith.constant 0 : index
    %c0_10 = arith.constant 0 : index
    %5 = vector.load %arg2[%c0_8, %c0_9, %c0_10] : memref<2x288x32xbf16, #tpu.memory_space<vmem>>, vector<1x288x32xbf16>
    %6 = vector.shape_cast %5 : vector<1x288x32xbf16> to vector<288x32xbf16>
    %c0_11 = arith.constant 0 : index
    %c0_12 = arith.constant 0 : index
    %c0_13 = arith.constant 0 : index
    %7 = vector.load %arg3[%c0_11, %c0_12, %c0_13] : memref<2x1x32xf32, #tpu.memory_space<vmem>>, vector<1x1x32xf32>
    %8 = vector.shape_cast %7 : vector<1x1x32xf32> to vector<1x32xf32>
    %c0_14 = arith.constant 0 : index
    %c0_15 = arith.constant 0 : index
    %c0_16 = arith.constant 0 : index
    %9 = vector.load %arg7[%c0_14, %c0_15, %c0_16] : memref<10x10x32xf32, #tpu.memory_space<vmem>>, vector<8x8x32xf32>
    %10 = vector.shape_cast %9 : vector<8x8x32xf32> to vector<64x32xf32>
    %11 = arith.truncf %10 : vector<64x32xf32> to vector<64x32xbf16>
    %c0_17 = arith.constant 0 : index
    %c0_18 = arith.constant 0 : index
    %12 = vector.load %arg8[%c0_17, %c0_18] : memref<64x288xbf16, #tpu.memory_space<vmem>>, vector<64x32xbf16>
    tpu.vector_store %arg8[%c0_17, %c0_18], %11 {strides = array<i32>} : memref<64x288xbf16, #tpu.memory_space<vmem>>, vector<64x32xbf16>,
    %c0_19 = arith.constant 0 : index
    %c1_20 = arith.constant 1 : index
    %c0_21 = arith.constant 0 : index
    %13 = vector.load %arg7[%c0_19, %c1_20, %c0_21] : memref<10x10x32xf32, #tpu.memory_space<vmem>>, vector<8x8x32xf32>
    %14 = vector.shape_cast %13 : vector<8x8x32xf32> to vector<64x32xf32>
    %15 = arith.truncf %14 : vector<64x32xf32> to vector<64x32xbf16>
    %c0_22 = arith.constant 0 : index
    %c32 = arith.constant 32 : index
    %16 = vector.load %arg8[%c0_22, %c32] : memref<64x288xbf16, #tpu.memory_space<vmem>>, vector<64x32xbf16>
    tpu.vector_store %arg8[%c0_22, %c32], %15 {strides = array<i32>} : memref<64x288xbf16, #tpu.memory_space<vmem>>, vector<64x32xbf16>,
    %c0_23 = arith.constant 0 : index
    %c2 = arith.constant 2 : index
    %c0_24 = arith.constant 0 : index
    %17 = vector.load %arg7[%c0_23, %c2, %c0_24] : memref<10x10x32xf32, #tpu.memory_space<vmem>>, vector<8x8x32xf32>
    %18 = vector.shape_cast %17 : vector<8x8x32xf32> to vector<64x32xf32>
    %19 = arith.truncf %18 : vector<64x32xf32> to vector<64x32xbf16>
    %c0_25 = arith.constant 0 : index
    %c64 = arith.constant 64 : index
    %20 = vector.load %arg8[%c0_25, %c64] : memref<64x288xbf16, #tpu.memory_space<vmem>>, vector<64x32xbf16>
    tpu.vector_store %arg8[%c0_25, %c64], %19 {strides = array<i32>} : memref<64x288xbf16, #tpu.memory_space<vmem>>, vector<64x32xbf16>,
    %c1_26 = arith.constant 1 : index
    %c0_27 = arith.constant 0 : index
    %c0_28 = arith.constant 0 : index
    %21 = vector.load %arg7[%c1_26, %c0_27, %c0_28] : memref<10x10x32xf32, #tpu.memory_space<vmem>>, vector<8x8x32xf32>
    %22 = vector.shape_cast %21 : vector<8x8x32xf32> to vector<64x32xf32>
    %23 = arith.truncf %22 : vector<64x32xf32> to vector<64x32xbf16>
    %c0_29 = arith.constant 0 : index
    %c96 = arith.constant 96 : index
    %24 = vector.load %arg8[%c0_29, %c96] : memref<64x288xbf16, #tpu.memory_space<vmem>>, vector<64x32xbf16>
    tpu.vector_store %arg8[%c0_29, %c96], %23 {strides = array<i32>} : memref<64x288xbf16, #tpu.memory_space<vmem>>, vector<64x32xbf16>,
    %c1_30 = arith.constant 1 : index
    %c1_31 = arith.constant 1 : index
    %c0_32 = arith.constant 0 : index
    %25 = vector.load %arg7[%c1_30, %c1_31, %c0_32] : memref<10x10x32xf32, #tpu.memory_space<vmem>>, vector<8x8x32xf32>
    %26 = vector.shape_cast %25 : vector<8x8x32xf32> to vector<64x32xf32>
    %27 = arith.truncf %26 : vector<64x32xf32> to vector<64x32xbf16>
    %c0_33 = arith.constant 0 : index
    %c128 = arith.constant 128 : index
    %28 = vector.load %arg8[%c0_33, %c128] : memref<64x288xbf16, #tpu.memory_space<vmem>>, vector<64x32xbf16>
    tpu.vector_store %arg8[%c0_33, %c128], %27 {strides = array<i32>} : memref<64x288xbf16, #tpu.memory_space<vmem>>, vector<64x32xbf16>,
    %c1_34 = arith.constant 1 : index
    %c2_35 = arith.constant 2 : index
    %c0_36 = arith.constant 0 : index
    %29 = vector.load %arg7[%c1_34, %c2_35, %c0_36] : memref<10x10x32xf32, #tpu.memory_space<vmem>>, vector<8x8x32xf32>
    %30 = vector.shape_cast %29 : vector<8x8x32xf32> to vector<64x32xf32>
    %31 = arith.truncf %30 : vector<64x32xf32> to vector<64x32xbf16>
    %c0_37 = arith.constant 0 : index
    %c160 = arith.constant 160 : index
    %32 = vector.load %arg8[%c0_37, %c160] : memref<64x288xbf16, #tpu.memory_space<vmem>>, vector<64x32xbf16>
    tpu.vector_store %arg8[%c0_37, %c160], %31 {strides = array<i32>} : memref<64x288xbf16, #tpu.memory_space<vmem>>, vector<64x32xbf16>,
    %c2_38 = arith.constant 2 : index
    %c0_39 = arith.constant 0 : index
    %c0_40 = arith.constant 0 : index
    %33 = vector.load %arg7[%c2_38, %c0_39, %c0_40] : memref<10x10x32xf32, #tpu.memory_space<vmem>>, vector<8x8x32xf32>
    %34 = vector.shape_cast %33 : vector<8x8x32xf32> to vector<64x32xf32>
    %35 = arith.truncf %34 : vector<64x32xf32> to vector<64x32xbf16>
    %c0_41 = arith.constant 0 : index
    %c192 = arith.constant 192 : index
    %36 = vector.load %arg8[%c0_41, %c192] : memref<64x288xbf16, #tpu.memory_space<vmem>>, vector<64x32xbf16>
    tpu.vector_store %arg8[%c0_41, %c192], %35 {strides = array<i32>} : memref<64x288xbf16, #tpu.memory_space<vmem>>, vector<64x32xbf16>,
    %c2_42 = arith.constant 2 : index
    %c1_43 = arith.constant 1 : index
    %c0_44 = arith.constant 0 : index
    %37 = vector.load %arg7[%c2_42, %c1_43, %c0_44] : memref<10x10x32xf32, #tpu.memory_space<vmem>>, vector<8x8x32xf32>
    %38 = vector.shape_cast %37 : vector<8x8x32xf32> to vector<64x32xf32>
    %39 = arith.truncf %38 : vector<64x32xf32> to vector<64x32xbf16>
    %c0_45 = arith.constant 0 : index
    %c224 = arith.constant 224 : index
    %40 = vector.load %arg8[%c0_45, %c224] : memref<64x288xbf16, #tpu.memory_space<vmem>>, vector<64x32xbf16>
    tpu.vector_store %arg8[%c0_45, %c224], %39 {strides = array<i32>} : memref<64x288xbf16, #tpu.memory_space<vmem>>, vector<64x32xbf16>,
    %c2_46 = arith.constant 2 : index
    %c2_47 = arith.constant 2 : index
    %c0_48 = arith.constant 0 : index
    %41 = vector.load %arg7[%c2_46, %c2_47, %c0_48] : memref<10x10x32xf32, #tpu.memory_space<vmem>>, vector<8x8x32xf32>
    %42 = vector.shape_cast %41 : vector<8x8x32xf32> to vector<64x32xf32>
    %43 = arith.truncf %42 : vector<64x32xf32> to vector<64x32xbf16>
    %c0_49 = arith.constant 0 : index
    %c256 = arith.constant 256 : index
    %44 = vector.load %arg8[%c0_49, %c256] : memref<64x288xbf16, #tpu.memory_space<vmem>>, vector<64x32xbf16>
    tpu.vector_store %arg8[%c0_49, %c256], %43 {strides = array<i32>} : memref<64x288xbf16, #tpu.memory_space<vmem>>, vector<64x32xbf16>,
    %c0_50 = arith.constant 0 : index
    %c0_51 = arith.constant 0 : index
    %45 = vector.load %arg8[%c0_50, %c0_51] : memref<64x288xbf16, #tpu.memory_space<vmem>>, vector<64x288xbf16>
    %cst_52 = arith.constant dense<0.000000e+00> : vector<64x32xf32>
    %46 = tpu.matmul %45, %6, %cst_52 {dimension_numbers = #tpu.dot_dimension_numbers<[1], [0], [0], [1], [0, 0, 1, 1], [], []>} : vector<64x288xbf16>, vector<288x32xbf16>, vector<64x32xf32> -> vector<64x32xf32>
    %47 = vector.broadcast %8 : vector<1x32xf32> to vector<64x32xf32>
    %48 = arith.addf %46, %47 : vector<64x32xf32>
    %cst_53 = arith.constant 0.000000e+00 : f32
    %49 = vector.broadcast %cst_53 : f32 to vector<64x32xf32>
    %50 = arith.maximumf %48, %49 : vector<64x32xf32>
    %51 = vector.shape_cast %50 : vector<64x32xf32> to vector<8x8x32xf32>
    %c1_54 = arith.constant 1 : index
    %c1_55 = arith.constant 1 : index
    %c0_56 = arith.constant 0 : index
    %52 = vector.load %arg7[%c1_54, %c1_55, %c0_56] : memref<10x10x32xf32, #tpu.memory_space<vmem>>, vector<8x8x32xf32>
    tpu.vector_store %arg7[%c1_54, %c1_55, %c0_56], %51 {strides = array<i32>} : memref<10x10x32xf32, #tpu.memory_space<vmem>>, vector<8x8x32xf32>,
    %c1_57 = arith.constant 1 : index
    %c0_58 = arith.constant 0 : index
    %c0_59 = arith.constant 0 : index
    %53 = vector.load %arg2[%c1_57, %c0_58, %c0_59] : memref<2x288x32xbf16, #tpu.memory_space<vmem>>, vector<1x288x32xbf16>
    %54 = vector.shape_cast %53 : vector<1x288x32xbf16> to vector<288x32xbf16>
    %c1_60 = arith.constant 1 : index
    %c0_61 = arith.constant 0 : index
    %c0_62 = arith.constant 0 : index
    %55 = vector.load %arg3[%c1_60, %c0_61, %c0_62] : memref<2x1x32xf32, #tpu.memory_space<vmem>>, vector<1x1x32xf32>
    %56 = vector.shape_cast %55 : vector<1x1x32xf32> to vector<1x32xf32>
    %c0_63 = arith.constant 0 : index
    %c0_64 = arith.constant 0 : index
    %c0_65 = arith.constant 0 : index
    %57 = vector.load %arg7[%c0_63, %c0_64, %c0_65] : memref<10x10x32xf32, #tpu.memory_space<vmem>>, vector<8x8x32xf32>
    %58 = vector.shape_cast %57 : vector<8x8x32xf32> to vector<64x32xf32>
    %59 = arith.truncf %58 : vector<64x32xf32> to vector<64x32xbf16>
    %c0_66 = arith.constant 0 : index
    %c0_67 = arith.constant 0 : index
    %60 = vector.load %arg8[%c0_66, %c0_67] : memref<64x288xbf16, #tpu.memory_space<vmem>>, vector<64x32xbf16>
    tpu.vector_store %arg8[%c0_66, %c0_67], %59 {strides = array<i32>} : memref<64x288xbf16, #tpu.memory_space<vmem>>, vector<64x32xbf16>,
    %c0_68 = arith.constant 0 : index
    %c1_69 = arith.constant 1 : index
    %c0_70 = arith.constant 0 : index
    %61 = vector.load %arg7[%c0_68, %c1_69, %c0_70] : memref<10x10x32xf32, #tpu.memory_space<vmem>>, vector<8x8x32xf32>
    %62 = vector.shape_cast %61 : vector<8x8x32xf32> to vector<64x32xf32>
    %63 = arith.truncf %62 : vector<64x32xf32> to vector<64x32xbf16>
    %c0_71 = arith.constant 0 : index
    %c32_72 = arith.constant 32 : index
    %64 = vector.load %arg8[%c0_71, %c32_72] : memref<64x288xbf16, #tpu.memory_space<vmem>>, vector<64x32xbf16>
    tpu.vector_store %arg8[%c0_71, %c32_72], %63 {strides = array<i32>} : memref<64x288xbf16, #tpu.memory_space<vmem>>, vector<64x32xbf16>,
    %c0_73 = arith.constant 0 : index
    %c2_74 = arith.constant 2 : index
    %c0_75 = arith.constant 0 : index
    %65 = vector.load %arg7[%c0_73, %c2_74, %c0_75] : memref<10x10x32xf32, #tpu.memory_space<vmem>>, vector<8x8x32xf32>
    %66 = vector.shape_cast %65 : vector<8x8x32xf32> to vector<64x32xf32>
    %67 = arith.truncf %66 : vector<64x32xf32> to vector<64x32xbf16>
    %c0_76 = arith.constant 0 : index
    %c64_77 = arith.constant 64 : index
    %68 = vector.load %arg8[%c0_76, %c64_77] : memref<64x288xbf16, #tpu.memory_space<vmem>>, vector<64x32xbf16>
    tpu.vector_store %arg8[%c0_76, %c64_77], %67 {strides = array<i32>} : memref<64x288xbf16, #tpu.memory_space<vmem>>, vector<64x32xbf16>,
    %c1_78 = arith.constant 1 : index
    %c0_79 = arith.constant 0 : index
    %c0_80 = arith.constant 0 : index
    %69 = vector.load %arg7[%c1_78, %c0_79, %c0_80] : memref<10x10x32xf32, #tpu.memory_space<vmem>>, vector<8x8x32xf32>
    %70 = vector.shape_cast %69 : vector<8x8x32xf32> to vector<64x32xf32>
    %71 = arith.truncf %70 : vector<64x32xf32> to vector<64x32xbf16>
    %c0_81 = arith.constant 0 : index
    %c96_82 = arith.constant 96 : index
    %72 = vector.load %arg8[%c0_81, %c96_82] : memref<64x288xbf16, #tpu.memory_space<vmem>>, vector<64x32xbf16>
    tpu.vector_store %arg8[%c0_81, %c96_82], %71 {strides = array<i32>} : memref<64x288xbf16, #tpu.memory_space<vmem>>, vector<64x32xbf16>,
    %c1_83 = arith.constant 1 : index
    %c1_84 = arith.constant 1 : index
    %c0_85 = arith.constant 0 : index
    %73 = vector.load %arg7[%c1_83, %c1_84, %c0_85] : memref<10x10x32xf32, #tpu.memory_space<vmem>>, vector<8x8x32xf32>
    %74 = vector.shape_cast %73 : vector<8x8x32xf32> to vector<64x32xf32>
    %75 = arith.truncf %74 : vector<64x32xf32> to vector<64x32xbf16>
    %c0_86 = arith.constant 0 : index
    %c128_87 = arith.constant 128 : index
    %76 = vector.load %arg8[%c0_86, %c128_87] : memref<64x288xbf16, #tpu.memory_space<vmem>>, vector<64x32xbf16>
    tpu.vector_store %arg8[%c0_86, %c128_87], %75 {strides = array<i32>} : memref<64x288xbf16, #tpu.memory_space<vmem>>, vector<64x32xbf16>,
    %c1_88 = arith.constant 1 : index
    %c2_89 = arith.constant 2 : index
    %c0_90 = arith.constant 0 : index
    %77 = vector.load %arg7[%c1_88, %c2_89, %c0_90] : memref<10x10x32xf32, #tpu.memory_space<vmem>>, vector<8x8x32xf32>
    %78 = vector.shape_cast %77 : vector<8x8x32xf32> to vector<64x32xf32>
    %79 = arith.truncf %78 : vector<64x32xf32> to vector<64x32xbf16>
    %c0_91 = arith.constant 0 : index
    %c160_92 = arith.constant 160 : index
    %80 = vector.load %arg8[%c0_91, %c160_92] : memref<64x288xbf16, #tpu.memory_space<vmem>>, vector<64x32xbf16>
    tpu.vector_store %arg8[%c0_91, %c160_92], %79 {strides = array<i32>} : memref<64x288xbf16, #tpu.memory_space<vmem>>, vector<64x32xbf16>,
    %c2_93 = arith.constant 2 : index
    %c0_94 = arith.constant 0 : index
    %c0_95 = arith.constant 0 : index
    %81 = vector.load %arg7[%c2_93, %c0_94, %c0_95] : memref<10x10x32xf32, #tpu.memory_space<vmem>>, vector<8x8x32xf32>
    %82 = vector.shape_cast %81 : vector<8x8x32xf32> to vector<64x32xf32>
    %83 = arith.truncf %82 : vector<64x32xf32> to vector<64x32xbf16>
    %c0_96 = arith.constant 0 : index
    %c192_97 = arith.constant 192 : index
    %84 = vector.load %arg8[%c0_96, %c192_97] : memref<64x288xbf16, #tpu.memory_space<vmem>>, vector<64x32xbf16>
    tpu.vector_store %arg8[%c0_96, %c192_97], %83 {strides = array<i32>} : memref<64x288xbf16, #tpu.memory_space<vmem>>, vector<64x32xbf16>,
    %c2_98 = arith.constant 2 : index
    %c1_99 = arith.constant 1 : index
    %c0_100 = arith.constant 0 : index
    %85 = vector.load %arg7[%c2_98, %c1_99, %c0_100] : memref<10x10x32xf32, #tpu.memory_space<vmem>>, vector<8x8x32xf32>
    %86 = vector.shape_cast %85 : vector<8x8x32xf32> to vector<64x32xf32>
    %87 = arith.truncf %86 : vector<64x32xf32> to vector<64x32xbf16>
    %c0_101 = arith.constant 0 : index
    %c224_102 = arith.constant 224 : index
    %88 = vector.load %arg8[%c0_101, %c224_102] : memref<64x288xbf16, #tpu.memory_space<vmem>>, vector<64x32xbf16>
    tpu.vector_store %arg8[%c0_101, %c224_102], %87 {strides = array<i32>} : memref<64x288xbf16, #tpu.memory_space<vmem>>, vector<64x32xbf16>,
    %c2_103 = arith.constant 2 : index
    %c2_104 = arith.constant 2 : index
    %c0_105 = arith.constant 0 : index
    %89 = vector.load %arg7[%c2_103, %c2_104, %c0_105] : memref<10x10x32xf32, #tpu.memory_space<vmem>>, vector<8x8x32xf32>
    %90 = vector.shape_cast %89 : vector<8x8x32xf32> to vector<64x32xf32>
    %91 = arith.truncf %90 : vector<64x32xf32> to vector<64x32xbf16>
    %c0_106 = arith.constant 0 : index
    %c256_107 = arith.constant 256 : index
    %92 = vector.load %arg8[%c0_106, %c256_107] : memref<64x288xbf16, #tpu.memory_space<vmem>>, vector<64x32xbf16>
    tpu.vector_store %arg8[%c0_106, %c256_107], %91 {strides = array<i32>} : memref<64x288xbf16, #tpu.memory_space<vmem>>, vector<64x32xbf16>,
    %c0_108 = arith.constant 0 : index
    %c0_109 = arith.constant 0 : index
    %93 = vector.load %arg8[%c0_108, %c0_109] : memref<64x288xbf16, #tpu.memory_space<vmem>>, vector<64x288xbf16>
    %cst_110 = arith.constant dense<0.000000e+00> : vector<64x32xf32>
    %94 = tpu.matmul %93, %54, %cst_110 {dimension_numbers = #tpu.dot_dimension_numbers<[1], [0], [0], [1], [0, 0, 1, 1], [], []>} : vector<64x288xbf16>, vector<288x32xbf16>, vector<64x32xf32> -> vector<64x32xf32>
    %95 = vector.broadcast %56 : vector<1x32xf32> to vector<64x32xf32>
    %96 = arith.addf %94, %95 : vector<64x32xf32>
    %cst_111 = arith.constant 0.000000e+00 : f32
    %97 = vector.broadcast %cst_111 : f32 to vector<64x32xf32>
    %98 = arith.maximumf %96, %97 : vector<64x32xf32>
    %99 = arith.truncf %98 : vector<64x32xf32> to vector<64x32xbf16>
    %c0_112 = arith.constant 0 : index
    %c0_113 = arith.constant 0 : index
    %100 = vector.load %arg4[%c0_112, %c0_113] : memref<32x128xbf16, #tpu.memory_space<vmem>>, vector<32x128xbf16>
    %cst_114 = arith.constant dense<0.000000e+00> : vector<64x128xf32>
    %101 = tpu.matmul %99, %100, %cst_114 {dimension_numbers = #tpu.dot_dimension_numbers<[1], [0], [0], [1], [0, 0, 1, 1], [], []>} : vector<64x32xbf16>, vector<32x128xbf16>, vector<64x128xf32> -> vector<64x128xf32>
    %c0_115 = arith.constant 0 : index
    %c0_116 = arith.constant 0 : index
    %102 = vector.load %arg5[%c0_115, %c0_116] : memref<1x128xf32, #tpu.memory_space<vmem>>, vector<1x128xf32>
    %103 = vector.broadcast %102 : vector<1x128xf32> to vector<64x128xf32>
    %104 = arith.addf %101, %103 : vector<64x128xf32>
    %cst_117 = arith.constant 0.000000e+00 : f32
    %105 = vector.broadcast %cst_117 : f32 to vector<64x128xf32>
    %106 = arith.maximumf %104, %105 : vector<64x128xf32>
    %107 = vector.shape_cast %106 : vector<64x128xf32> to vector<8x8x128xf32>
    %c0_118 = arith.constant 0 : index
    %c0_119 = arith.constant 0 : index
    %c0_120 = arith.constant 0 : index
    %c0_121 = arith.constant 0 : index
    %108 = vector.load %arg6[%c0_118, %c0_119, %c0_120, %c0_121] : memref<1x8x8x128xf32, #tpu.memory_space<vmem>>, vector<1x8x8x128xf32>
    %109 = vector.shape_cast %108 : vector<1x8x8x128xf32> to vector<8x8x128xf32>
    %110 = vector.shape_cast %107 : vector<8x8x128xf32> to vector<1x8x8x128xf32>
    tpu.vector_store %arg6[%c0_118, %c0_119, %c0_120, %c0_121], %110 {strides = array<i32>} : memref<1x8x8x128xf32, #tpu.memory_space<vmem>>, vector<1x8x8x128xf32>,
    return
  }
  func.func @transform_0(%arg0: i32) -> (i32, i32, i32, i32) {
    %c0_i32 = arith.constant 0 : i32
    %c0_i32_0 = arith.constant 0 : i32
    %c0_i32_1 = arith.constant 0 : i32
    %c0_i32_2 = arith.constant 0 : i32
    return %arg0, %c0_i32, %c0_i32_0, %c0_i32_1 : i32, i32, i32, i32
  }
  func.func @transform_1(%arg0: i32) -> (i32, i32, i32) {
    %c0_i32 = arith.constant 0 : i32
    %c0_i32_0 = arith.constant 0 : i32
    %c0_i32_1 = arith.constant 0 : i32
    %c0_i32_2 = arith.constant 0 : i32
    return %c0_i32, %c0_i32_0, %c0_i32_1 : i32, i32, i32
  }
  func.func @transform_2(%arg0: i32) -> (i32, i32, i32) {
    %c0_i32 = arith.constant 0 : i32
    %c0_i32_0 = arith.constant 0 : i32
    %c0_i32_1 = arith.constant 0 : i32
    %c0_i32_2 = arith.constant 0 : i32
    return %c0_i32, %c0_i32_0, %c0_i32_1 : i32, i32, i32
  }
  func.func @transform_3(%arg0: i32) -> (i32, i32) {
    %c0_i32 = arith.constant 0 : i32
    %c0_i32_0 = arith.constant 0 : i32
    %c0_i32_1 = arith.constant 0 : i32
    return %c0_i32, %c0_i32_0 : i32, i32
  }
  func.func @transform_4(%arg0: i32) -> (i32, i32) {
    %c0_i32 = arith.constant 0 : i32
    %c0_i32_0 = arith.constant 0 : i32
    %c0_i32_1 = arith.constant 0 : i32
    return %c0_i32, %c0_i32_0 : i32, i32
  }
  func.func @transform_5(%arg0: i32) -> (i32, i32, i32, i32) {
    %c0_i32 = arith.constant 0 : i32
    %c0_i32_0 = arith.constant 0 : i32
    %c0_i32_1 = arith.constant 0 : i32
    %c0_i32_2 = arith.constant 0 : i32
    return %arg0, %c0_i32, %c0_i32_0, %c0_i32_1 : i32, i32, i32, i32
  }
}

</mosaic_0001>

<bundles_post_ra>
// kernel: tpu_custom_call.1
= control target key start
LH: loop header
LB: loop body
LE: loop exit
PB: predicated region body
PF: predicated region fallthrough
CT: control target
= control target key end

     0   :  { %10 = vsyncpa [#allocation5], 0  ;;  %s2498_s0 = inlined_call_operand.vmem [shape: f32[2,8,8,32], index: 0, kind: input, shape index: {}]   ;;  %s2499_s1 = inlined_call_operand.vmem [shape: bf16[2,288,32], index: 1, kind: input, shape index: {}]   ;;  %s2500_s2 = inlined_call_operand.vmem [shape: f32[2,1,32], index: 2, kind: input, shape index: {}]   ;;  %s2501_s3 = inlined_call_operand.vmem [shape: bf16[32,128], index: 3, kind: input, shape index: {}]   ;;  %s2502_s4 = inlined_call_operand.vmem [shape: f32[1,128], index: 4, kind: input, shape index: {}]   ;;  %s2503_s5 = inlined_call_operand.hbm [shape: f32[2,8,8,128], index: 5, kind: output, shape index: {}]  }
   0x1   :  { %12 = vsyncpa [#allocation5 + $0x1], 0  ;;  %s2001_s18 = smov 0   ;;  %s2003_s19 = smov 0  }
   0x2   :  { %s2005_s20 = smov 0   ;;  %s2007_s21 = smov 0  }
   0x3 LB: > { %s2022_s22 = sadd.s32 4294967295, %s1962_s21   ;;  %s1579_s23 = sadd.s32 4294967294, %s1962_s21   ;;  %s1962_s21 = sphi %s2007_s21, %s2509_s21   ;;  %s1958_s20 = sphi %s2005_s20, %s2508_s20   ;;  %s1954_s19 = sphi %s2003_s19, %s2507_s19   ;;  %s1950_s18 = sphi %s2001_s18, %s2506_s18  }
   0x4   : > { %s2026_s24 = sadd.s32 1, %s1962_s21   ;;  %s135_s25 = sadd.s32 1, %s1958_s20 }
   0x5   : > { %s132_s26 = ssub.s32 %s1962_s21, %s2026_s24  ;;  %p145_p0 = scmp.ne.s32.totalorder %s1958_s20, %s1954_s19 }
   0x6   : > { %p133_p1 = scmp.eq.s32.totalorder %s132_s26, 0  ;;  %p146_p2 = scmp.eq.s32.totalorder %s2022_s22, 1 }
   0x7   : > { %p151_p3 = scmp.ne.s32.totalorder %s1954_s19, %s1950_s18  ;;  %p152_p4 = scmp.eq.s32.totalorder %s1579_s23, 1 }
   0x8   : > { %s2037_s27 = scalar_select %p133_p1, %s1958_s20, %s135_s25  }
   0x9   : > { %p2039_p5 = por %p146_p2, %p145_p0  ;;  %p2043_p6 = por %p152_p4, %p151_p3 }
   0xa   : > { %p1582_p7 = scmp.ge.s32.totalorder %s1962_s21, 1  ;;  %p190_p8 = scmp.lt.s32.totalorder %s1962_s21, 3 }
   0xc   : > { %p191_p9 = pnand %p1582_p7, %p190_p8 }
   0xd   : > { %p218_p10 = scmp.lt.s32.totalorder (!%p191_p9), %s2022_s22, 1  ;;  %vm224_vm0 = vcmask (!%p191_p9), 261120   ;;  %vm226_vm1 = vcmask (!%p191_p9), 254976   ;;  %v1862_v0 = vld [vmem:[%s2499_s1 + $0x40] sm:$0xff] (!%p191_p9)   ;;  %v1964_v1 = vmov (!%p191_p9), 0.0   ;;  %v1864_v3 = vld [vmem:[%s2499_s1 + $0x48] sm:$0xff] (!%p191_p9)  }
   0xe   : > { %194 = sbr.rel (%p191_p9) target bundleno = 1035 (0x40b), region = 40  ;;  %228 = vst.msk [vmem:[#allocation2 + $0x10] sm:$0xff] (!%p191_p9), %vm224_vm0, %v1964_v1  ;;  %230 = vst.msk [vmem:[#allocation2 + $0x20] sm:$0xff] (!%p191_p9), %vm224_vm0, %v1964_v1  ;;  %1683 = vmatprep.subr.bf16.mxu0 (!%p191_p9), %v1862_v0  ;;  %v1863_v2 = vld [vmem:[%s2499_s1] sm:$0xff] (!%p191_p9)   ;;  %v1865_v4 = vld [vmem:[%s2499_s1 + $0x8] sm:$0xff] (!%p191_p9)   ;;  %s1966_s13 = smov (!%p191_p9), 64  }
   0xf   : > { %229 = vst.msk [vmem:[#allocation2 + $0x18] sm:$0x3] (!%p191_p9), %vm226_vm1, %v1964_v1  ;;  %231 = vst.msk [vmem:[#allocation2 + $0x28] sm:$0x3] (!%p191_p9), %vm226_vm1, %v1964_v1  ;;  %1684 = vmatpush3.bf16.msra.mxu0 (!%p191_p9), %v1863_v2  ;;  %v1866_v5 = vld [vmem:[%s2499_s1 + $0x50] sm:$0xff] (!%p191_p9)   ;;  %v1868_v15 = vld [vmem:[%s2499_s1 + $0x58] sm:$0xff] (!%p191_p9)  }
  0x10   : > { %225 = vst.msk [vmem:[#allocation2] sm:$0xff] (!%p191_p9), %vm224_vm0, %v1964_v1  ;;  %232 = vst.msk [vmem:[#allocation2 + $0x30] sm:$0xff] (!%p191_p9), %vm224_vm0, %v1964_v1  ;;  %1685 = vmatprep.subr.bf16.mxu0 (!%p191_p9), %v1864_v3  ;;  %v1867_v14 = vld [vmem:[%s2499_s1 + $0x10] sm:$0xff] (!%p191_p9)   ;;  %v1869_v17 = vld [vmem:[%s2499_s1 + $0x18] sm:$0xff] (!%p191_p9)   ;;  %s1967_s23 = smov (!%p191_p9), 96   ;;  %vm344_vm2 = vcmask (!%p191_p9), 523520  }
  0x11   : > { %227 = vst.msk [vmem:[#allocation2 + $0x8] sm:$0x3] (!%p191_p9), %vm226_vm1, %v1964_v1  ;;  %233 = vst.msk [vmem:[#allocation2 + $0x38] sm:$0x3] (!%p191_p9), %vm226_vm1, %v1964_v1  ;;  %v1870_v19 = vld [vmem:[%s2499_s1 + $0x60] sm:$0xff] (!%p191_p9)   ;;  %v1872_v56 = vld [vmem:[%s2499_s1 + $0x68] sm:$0xff] (!%p191_p9)  }
  0x12   : > { %234 = vst.msk [vmem:[#allocation2 + $0x40] sm:$0xff] (!%p191_p9), %vm224_vm0, %v1964_v1  ;;  %236 = vst.msk [vmem:[#allocation2 + $0x50] sm:$0xff] (!%p191_p9), %vm224_vm0, %v1964_v1  ;;  %v1871_v53 = vld [vmem:[%s2499_s1 + $0x20] sm:$0xff] (!%p191_p9)   ;;  %v1873_v58 = vld [vmem:[%s2499_s1 + $0x28] sm:$0xff] (!%p191_p9)   ;;  %vm377_vm3 = vcmask (!%p191_p9), 785920   ;;  %vm410_vm4 = vcmask (!%p191_p9), 1048320  }
  0x13   : > { %235 = vst.msk [vmem:[#allocation2 + $0x48] sm:$0x3] (!%p191_p9), %vm226_vm1, %v1964_v1  ;;  %237 = vst.msk [vmem:[#allocation2 + $0x58] sm:$0x3] (!%p191_p9), %vm226_vm1, %v1964_v1  ;;  %1686 = vmatpush3.bf16.msra.mxu0 (!%p191_p9), %v1865_v4  ;;  %v1874_v60 = vld [vmem:[%s2499_s1 + $0x70] sm:$0xff] (!%p191_p9)   ;;  %v1876_v62 = vld [vmem:[%s2499_s1 + $0x78] sm:$0xff] (!%p191_p9)  }
  0x14   : > { %238 = vst.msk [vmem:[#allocation2 + $0x60] sm:$0xff] (!%p191_p9), %vm224_vm0, %v1964_v1  ;;  %240 = vst.msk [vmem:[#allocation2 + $0x70] sm:$0xff] (!%p191_p9), %vm224_vm0, %v1964_v1  ;;  %1687 = vmatprep.subr.bf16.mxu0 (!%p191_p9), %v1866_v5  ;;  %v1875_v61 = vld [vmem:[%s2499_s1 + $0x30] sm:$0xff] (!%p191_p9)   ;;  %v1877_v63 = vld [vmem:[%s2499_s1 + $0x80] sm:$0xff] (!%p191_p9)   ;;  %s215_s6 = sand.u32 (!%p191_p9), 1, %s1954_s19   ;;  %s1682_s11 = sshll.u32 (!%p191_p9), %s2022_s22, 10 }
  0x15   : > { %239 = vst.msk [vmem:[#allocation2 + $0x68] sm:$0x3] %vm226_vm1, %v1964_v1  ;;  %241 = vst.msk [vmem:[#allocation2 + $0x78] sm:$0x3] %vm226_vm1, %v1964_v1  ;;  %s219_s7 = scalar_select %p218_p10, %s2022_s22, 1  ;;  %1781 = vmatprep.subr.bf16.mxu1 %v1877_v63  ;;  %v1878_v0 = vld [vmem:[%s2499_s1 + $0x38] sm:$0xff]  }
  0x16   : > { %242 = vst.msk [vmem:[#allocation2 + $0x80] sm:$0xff] %vm224_vm0, %v1964_v1  ;;  %244 = vst.msk [vmem:[#allocation2 + $0x90] sm:$0xff] %vm224_vm0, %v1964_v1  ;;  %1782 = vmatpush3.bf16.msra.mxu1 %v1877_v63  ;;  %s1583_s9 = sshll.u32 %s215_s6, 6  ;;  %s2457_s22 = scalar_lea.sflag [#allocation5], %s215_s6 }
  0x17   : > { %243 = vst.msk [vmem:[#allocation2 + $0x88] sm:$0x3] %vm226_vm1, %v1964_v1  ;;  %245 = vst.msk [vmem:[#allocation2 + $0x98] sm:$0x3] %vm226_vm1, %v1964_v1  ;;  %s1681_s12 = sshll.u32 %s219_s7, 6  ;;  %1688 = vmatpush3.bf16.msra.mxu0 %v1867_v14  ;;  %v2166_v54 = vld [vmem:[#allocation2] sm:$0xff] }
  0x18   : > { %s222_s17 = scalar_lea.vmem %s2498_s0, %s1681_s12  ;;  %v2105_v16 = vld [vmem:[#allocation2 + $0x1] sm:$0xff]  ;;  %1689 = vmatprep.subr.bf16.mxu0 %v1868_v15  ;;  %s1965_s12 = smov 32  }
  0x19   : > { %v246_v6 = vld [vmem:[%s222_s17] sm:$0xff]  ;;  %v247_v7 = vld [vmem:[%s222_s17 + $0x8] sm:$0xff]  ;;  %v248_v8 = vld [vmem:[%s222_s17 + $0x10] sm:$0xff]  ;;  %s217_s10 = scalar_lea.vmem [#allocation4], %s1583_s9 }
  0x1a   : > { %255 = vst.msk [vmem:[#allocation2 + $0x11] sm:$0xff] %vm224_vm0, %v246_v6  ;;  %256 = vst.msk [vmem:[#allocation2 + $0x21] sm:$0xff] %vm224_vm0, %v247_v7  ;;  %v249_v9 = vld [vmem:[%s222_s17 + $0x18] sm:$0xff]  ;;  %v250_v10 = vld [vmem:[%s222_s17 + $0x20] sm:$0xff]  ;;  %s1517_s14 = sshll.u32 %s217_s10, 4  ;;  %s2453_s14 = int_to_ptr.vmem [resolvable:$true] %s1517_s14 }
  0x1b   : > { %257 = vst.msk [vmem:[#allocation2 + $0x31] sm:$0xff] %vm224_vm0, %v248_v8  ;;  %v251_v11 = vld [vmem:[%s222_s17 + $0x28] sm:$0xff]  ;;  %258 = vst.msk [vmem:[#allocation2 + $0x41] sm:$0xff] %vm224_vm0, %v249_v9  ;;  %v252_v12 = vld [vmem:[%s222_s17 + $0x30] sm:$0xff]  ;;  %1690 = vmatpush3.bf16.msra.mxu0 %v1869_v17 }
  0x1c   : > { %259 = vst.msk [vmem:[#allocation2 + $0x51] sm:$0xff] %vm224_vm0, %v250_v10  ;;  %260 = vst.msk [vmem:[#allocation2 + $0x61] sm:$0xff] %vm224_vm0, %v251_v11  ;;  %v253_v13 = vld [vmem:[%s222_s17 + $0x38] sm:$0xff]  ;;  %v2110_v18 = vld [vmem:[#allocation2 + $0x2] sm:$0xff]  ;;  %1691 = vmatprep.subr.bf16.mxu0 %v1870_v19  ;;  %s2451_s17 = scalar_lea.hbm %s2503_s5, %s1682_s11 }
  0x1d   : > { %261 = vst.msk [vmem:[#allocation2 + $0x71] sm:$0xff] %vm224_vm0, %v252_v12  ;;  %262 = vst.msk [vmem:[#allocation2 + $0x81] sm:$0xff] %vm224_vm0, %v253_v13  ;;  %v1879_v1 = vld [vmem:[%s2499_s1 + $0x88] sm:$0xff]  }
  0x1e   : > { %1783 = vmatprep.subr.bf16.mxu1 %v1879_v1  ;;  %v2207_v9 = vld [vmem:[#allocation2 + $0x92] sm:$0xff] }
  0x1f   : > { %1692 = vmatpush3.bf16.msra.mxu0 %v1871_v53  ;;  %1784 = vmatpush3.bf16.msra.mxu1 %v1879_v1 }
  0x20   : > { %1693 = vmatprep.subr.bf16.mxu0 %v1872_v56 }
  0x21   : > { %v431_v20 = vld [vmem:[#allocation2 + $0x12] sm:$0xff]  ;;  %v432_v21 = vld [vmem:[#allocation2 + $0x22] sm:$0xff] }
  0x22   : > { %v464_v22 = vld [vmem:[#allocation2 + $0x20] sm:$0xff]  ;;  %v439_v23 = vpack.c.bf16 %v432_v21, %v431_v20  ;;  %v2115_v24 = vld [vmem:[#allocation2 + $0x30] sm:$0xff]  ;;  %v357_v35 = vpack.c.bf16 %v431_v20, %v2110_v18 }
  0x23   : > { %v317_v25 = vld [vmem:[#allocation2 + $0x11] sm:$0xff]  ;;  %v496_v26 = vld [vmem:[#allocation2 + $0x21] sm:$0xff]  ;;  %v472_v27 = vpack.c.bf16 %v2115_v24, %v464_v22  ;;  %1694 = vmatpush3.bf16.msra.mxu0 %v1873_v58 }
  0x24   : > { %v433_v28 = vld [vmem:[#allocation2 + $0x32] sm:$0xff]  ;;  %v423_v29 = vpack.c.bf16 %v496_v26, %v317_v25  ;;  %447 = vrot.lane.b32.xlu0 %v439_v23, %s1965_s12  ;;  %v324_v30 = vpack.c.bf16 %v317_v25, %v2105_v16  ;;  %v2120_v32 = vld [vmem:[#allocation2 + $0x40] sm:$0xff]  ;;  %1695 = vmatprep.subr.bf16.mxu0 %v1874_v60 }
  0x25   : > { %v497_v31 = vld [vmem:[#allocation2 + $0x31] sm:$0xff]  ;;  %v2124_v34 = vpack.c.bf16 %v433_v28, %v432_v21  ;;  %480 = vrot.lane.b32.xlu1 %v472_v27, %s1966_s13  ;;  %v434_v36 = vld [vmem:[#allocation2 + $0x42] sm:$0xff]  ;;  %313 = vst.msk [vmem:[#allocation3 + $0x18] sm:$0xff] %vm224_vm0, %v472_v27  ;;  %v391_v5 = vpack.c.bf16 %v2120_v32, %v2115_v24 }
  0x26   : > { %v2122_v33 = vld [vmem:[#allocation2 + $0x50] sm:$0xff]  ;;  %v498_v38 = vld [vmem:[#allocation2 + $0x41] sm:$0xff]  ;;  %427 = vst.msk [vmem:[#allocation3 + $0x8] sm:$0xff] %vm224_vm0, %v423_v29  ;;  %v504_v48 = vpack.c.bf16 %v497_v31, %v496_v26  ;;  %v440_v57 = vpack.c.bf16 %v434_v36, %v433_v28 }
  0x27   : > { %v473_v37 = vpack.c.bf16 %v2122_v33, %v2120_v32  ;;  %v2130_v39 = vld [vmem:[#allocation2 + $0x52] sm:$0xff]  ;;  %v2134_v41 = vld [vmem:[#allocation2 + $0x60] sm:$0xff]  ;;  %v424_v44 = vpack.c.bf16 %v498_v38, %v497_v31  ;;  %540 = vst.msk [vmem:[#allocation3 + $0x10] sm:$0xff] %vm224_vm0, %v2124_v34  ;;  %1696 = vmatpush3.bf16.msra.mxu0 %v1875_v61 }
  0x28   : > { %v382_v40 = vld [vmem:[#allocation2 + $0x10] sm:$0xff]  ;;  %v2139_v43 = vpack.c.bf16 %v2130_v39, %v434_v36  ;;  %v2143_v45 = vld [vmem:[#allocation2 + $0x62] sm:$0xff]  ;;  %332 = vrot.lane.b32.xlu0 %v324_v30, %s1965_s12  ;;  %1697 = vmatprep.subr.bf16.mxu0 %v1876_v62  ;;  %v392_v17 = vpack.c.bf16 %v2134_v41, %v2122_v33 }
  0x29   : > { %v2136_v42 = vld [vmem:[#allocation2 + $0x70] sm:$0xff]  ;;  %314 = vst.msk [vmem:[#allocation3 + $0x30] sm:$0xff] %vm224_vm0, %v473_v37  ;;  %428 = vst.msk [vmem:[#allocation3 + $0x20] sm:$0xff] %vm224_vm0, %v424_v44  ;;  %365 = vrot.lane.b32.xlu1 %v357_v35, %s1966_s13  ;;  %v390_v50 = vpack.c.bf16 %v464_v22, %v382_v40  ;;  %v500_v52 = vld [vmem:[#allocation2 + $0x61] sm:$0xff]  ;;  %v308_v55 = vpack.c.bf16 %v382_v40, %v2166_v54  ;;  %v441_v11 = vpack.c.bf16 %v2143_v45, %v2130_v39 }
  0x2a   : > { %v2147_v46 = vpack.c.bf16 %v2136_v42, %v2134_v41  ;;  %v2149_v47 = vld [vmem:[#allocation2 + $0x72] sm:$0xff]  ;;  %541 = vst.msk [vmem:[#allocation3 + $0x28] sm:$0xff] %vm224_vm0, %v2139_v43  ;;  %v438_v4 = vld [vmem:[#allocation2 + $0x82] sm:$0xff] }
  0x2b   : > { %v2155_v49 = vpack.c.bf16 %v2149_v47, %v2143_v45  ;;  %v499_v51 = vld [vmem:[#allocation2 + $0x51] sm:$0xff]  ;;  %312 = vst.msk [vmem:[#allocation3] sm:$0xff] %vm224_vm0, %v308_v55  ;;  %v502_v7 = vld [vmem:[#allocation2 + $0x81] sm:$0xff]  ;;  %1698 = vmatpush3.bf16.msra.mxu0 %v1878_v0  ;;  %v539_v10 = vpack.c.bf16 %v2207_v9, %v438_v4  ;;  %v442_v19 = vpack.c.bf16 %v438_v4, %v2149_v47 }
  0x2c   : > { %315 = vst.msk [vmem:[#allocation3 + $0x48] sm:$0xff] %vm224_vm0, %v2147_v46  ;;  %512 = vrot.lane.b32.xlu0 %v504_v48, %s1967_s23  ;;  %v425_v59 = vpack.c.bf16 %v500_v52, %v499_v51  ;;  %v505_v3 = vpack.c.bf16 %v499_v51, %v498_v38  ;;  %v501_v6 = vld [vmem:[#allocation2 + $0x71] sm:$0xff]  ;;  %v470_v20 = vld [vmem:[#allocation2 + $0x80] sm:$0xff] }
  0x2d   : > { %542 = vst.msk [vmem:[#allocation3 + $0x40] sm:$0xff] %vm224_vm0, %v2155_v49  ;;  %398 = vrot.lane.b32.xlu1 %v390_v50, %s1967_s23  ;;  %v426_v12 = vpack.c.bf16 %v502_v7, %v501_v6  ;;  %543 = vst.msk [vmem:[#allocation3 + $0x58] sm:$0xff] %vm224_vm0, %v539_v10  ;;  %v506_v14 = vpack.c.bf16 %v501_v6, %v500_v52  ;;  %v2230_v21 = vld [vmem:[#allocation2 + $0x90] sm:$0xff]  ;;  %v393_v25 = vpack.c.bf16 %v470_v20, %v2136_v42  ;;  %v1881_v4 = vld [vmem:[%s2499_s1 + $0x118] sm:$0xff]  }
  0x2e   : > { %429 = vst.msk [vmem:[#allocation3 + $0x38] sm:$0xff] %vm224_vm0, %v425_v59  ;;  %v546_v2 = vld [vmem:[#allocation3 + $0x10] sm:$0xff]  ;;  %v475_v22 = vpack.c.bf16 %v2230_v21, %v470_v20 }
  0x2f   : > { %1785 = vmatprep.mubr.msk.bf16.mxu1 %vm224_vm0, %v546_v2  ;;  %430 = vst.msk [vmem:[#allocation3 + $0x50] sm:$0xff] %vm224_vm0, %v426_v12  ;;  %v2235_v23 = vld [vmem:[#allocation2 + $0x91] sm:$0xff]  ;;  %v2299_v12 = vld [vmem:[%s2500_s2] ss:$0 sm:$0xff] }
  0x30   : > { %449 = vrot.lane.b32.xlu0 %v440_v57, %s1965_s12  ;;  %v507_v24 = vpack.c.bf16 %v2235_v23, %v502_v7  ;;  %v1883_v6 = vld [vmem:[%s2499_s1 + $0x90] sm:$0xff]   ;;  %v1884_v7 = vld [vmem:[%s2499_s1 + $0xd8] sm:$0xff]  }
  0x31   : > { %334 = vrot.lane.b32.xlu1 %v504_v48, %s1965_s12  ;;  %v549_v8 = vld [vmem:[#allocation3 + $0x28] sm:$0xff] }
  0x32   : > { %1786 = vmatmul.mubr.msk.bf16.vlgmr.msra.gmra.mrb[0].mxu1 %vm224_vm0, %v549_v8  ;;  %v1885_v8 = vld [vmem:[%s2499_s1 + $0x98] sm:$0xff]  }
  0x34   : > { %482 = vrot.lane.b32.xlu0 %v473_v37, %s1966_s13  ;;  %v552_v13 = vld [vmem:[#allocation3 + $0x40] sm:$0xff]  ;;  %v555_v15 = vld [vmem:[#allocation3 + $0x58] sm:$0xff] }
  0x35   : > { %367 = vrot.lane.b32.xlu1 %v2124_v34, %s1966_s13  ;;  %1789 = vmatprep.mubr.msk.bf16.mxu1 %vm224_vm0, %v552_v13 }
  0x38   : > { %514 = vrot.lane.b32.xlu0 %v505_v3, %s1967_s23 }
  0x39   : > { %400 = vrot.lane.b32.xlu1 %v391_v5, %s1967_s23  ;;  %v1882_v5 = vld [vmem:[%s2499_s1 + $0xd0] sm:$0xff]  }
  0x3a   : > { %1790 = vmatmul.mubr.msk.bf16.gmra.mrb[4].mxu1 %vm224_vm0, %v555_v15  ;;  %1729 = vmatprep.subr.bf16.mxu1 %v1882_v5  ;;  %v1897_v5 = vld [vmem:[%s2499_s1 + $0xc8] sm:$0xff]  }
  0x3b   : > { %1730 = vmatpush3.bf16.msra.mxu1 %v1883_v6 }
  0x3c   : > { %451 = vrot.lane.b32.xlu0 %v441_v11, %s1965_s12  ;;  %1731 = vmatprep.subr.bf16.mxu1 %v1884_v7 }
  0x3d   : > { %336 = vrot.lane.b32.xlu1 %v505_v3, %s1965_s12  ;;  %v1880_v3 = vld [vmem:[%s2499_s1 + $0x110] sm:$0xff]  }
  0x3e   : > { %1793 = vmatprep.subr.bf16.mxu0 %v1880_v3 }
  0x3f   : > { %1732 = vmatpush3.bf16.msra.mxu1 %v1885_v8 }
  0x40   : > { %484 = vrot.lane.b32.xlu0 %v2147_v46, %s1966_s13 }
  0x41   : > { %369 = vrot.lane.b32.xlu1 %v2139_v43, %s1966_s13 }
  0x44   : > { %516 = vrot.lane.b32.xlu0 %v506_v14, %s1967_s23 }
  0x45   : > { %402 = vrot.lane.b32.xlu1 %v392_v17, %s1967_s23 }
  0x48   : > { %453 = vrot.lane.b32.xlu0 %v442_v19, %s1965_s12 }
  0x49   : > { %338 = vrot.lane.b32.xlu1 %v506_v14, %s1965_s12 }
  0x4c   : > { %486 = vrot.lane.b32.xlu0 %v475_v22, %s1966_s13 }
  0x4d   : > { %371 = vrot.lane.b32.xlu1 %v2155_v49, %s1966_s13 }
  0x50   : > { %518 = vrot.lane.b32.xlu0 %v507_v24, %s1967_s23  ;;  %v1886_v24 = vld [vmem:[%s2499_s1 + $0xe0] sm:$0xff]  }
  0x51   : > { %404 = vrot.lane.b32.xlu1 %v393_v25, %s1967_s23  ;;  %1733 = vmatprep.subr.bf16.mxu1 %v1886_v24 }
  0x96   : > { %v448_v26 = vpop.permute.xlu0 %447 }
  0x97   : > { %459 = vst.msk [vmem:[#allocation3 + $0x8] sm:$0xff] %vm344_vm2, %v448_v26  ;;  %v481_v27 = vpop.permute.xlu1 %480 }
  0x98   : > { %492 = vst.msk [vmem:[#allocation3 + $0x8] sm:$0xff] %vm377_vm3, %v481_v27  ;;  %v1887_v27 = vld [vmem:[%s2499_s1 + $0xa0] sm:$0xff]  }
  0x99   : > { %1734 = vmatpush3.bf16.msra.mxu1 %v1887_v27 }
  0x9a   : > { %v333_v28 = vpop.permute.xlu0 %332 }
  0x9b   : > { %345 = vst.msk [vmem:[#allocation3] sm:$0xff] %vm344_vm2, %v333_v28  ;;  %v366_v29 = vpop.permute.xlu1 %365 }
  0x9c   : > { %378 = vst.msk [vmem:[#allocation3] sm:$0xff] %vm377_vm3, %v366_v29  ;;  %v1888_v29 = vld [vmem:[%s2499_s1 + $0xe8] sm:$0xff]  }
  0x9d   : > { %1735 = vmatprep.subr.bf16.mxu1 %v1888_v29 }
  0x9e   : > { %v513_v30 = vpop.permute.xlu0 %512 }
  0x9f   : > { %524 = vst.msk [vmem:[#allocation3 + $0x8] sm:$0xff] %vm410_vm4, %v513_v30  ;;  %v399_v31 = vpop.permute.xlu1 %398  ;;  %v1889_v30 = vld [vmem:[%s2499_s1 + $0xa8] sm:$0xff]  }
  0xa0   : > { %411 = vst.msk [vmem:[#allocation3] sm:$0xff] %vm410_vm4, %v399_v31  ;;  %1736 = vmatpush3.bf16.msra.mxu1 %v1889_v30 }
  0xa2   : > { %v450_v32 = vpop.permute.xlu0 %449 }
  0xa3   : > { %460 = vst.msk [vmem:[#allocation3 + $0x20] sm:$0xff] %vm344_vm2, %v450_v32  ;;  %v335_v33 = vpop.permute.xlu1 %334 }
  0xa4   : > { %346 = vst.msk [vmem:[#allocation3 + $0x18] sm:$0xff] %vm344_vm2, %v335_v33 }
  0xa6   : > { %v483_v34 = vpop.permute.xlu0 %482  ;;  %v545_v35 = vld [vmem:[#allocation3 + $0x8] sm:$0xff] }
  0xa7   : > { %493 = vst.msk [vmem:[#allocation3 + $0x20] sm:$0xff] %vm377_vm3, %v483_v34  ;;  %v368_v36 = vpop.permute.xlu1 %367  ;;  %714 = vmatprep.mubr.bf16.mxu0 %v545_v35  ;;  %v544_v37 = vld [vmem:[#allocation3] sm:$0xff] }
  0xa8   : > { %379 = vst.msk [vmem:[#allocation3 + $0x18] sm:$0xff] %vm377_vm3, %v368_v36  ;;  %715 = vmatmul.mubr.bf16.vlgmr.msra.gmra.mrb[0].mxu0 %v544_v37  ;;  %v1890_v36 = vld [vmem:[%s2499_s1 + $0xf0] sm:$0xff]  }
  0xa9   : > { %1794 = vmatpush3.bf16.msra.mxu0 %v1880_v3  ;;  %v1891_v37 = vld [vmem:[%s2499_s1 + $0xb0] sm:$0xff]   ;;  %1737 = vmatprep.subr.bf16.mxu1 %v1890_v36 }
  0xaa   : > { %v515_v38 = vpop.permute.xlu0 %514  ;;  %1795 = vmatprep.subr.bf16.mxu0 %v1881_v4  ;;  %1738 = vmatpush3.bf16.msra.mxu1 %v1891_v37 }
  0xab   : > { %525 = vst.msk [vmem:[#allocation3 + $0x20] sm:$0xff] %vm410_vm4, %v515_v38  ;;  %v401_v39 = vpop.permute.xlu1 %400 }
  0xac   : > { %412 = vst.msk [vmem:[#allocation3 + $0x18] sm:$0xff] %vm410_vm4, %v401_v39 }
  0xad   : > { %1796 = vmatpush3.bf16.msra.mxu0 %v1881_v4  ;;  %v1896_v4 = vld [vmem:[%s2499_s1 + $0x108] sm:$0xff]  }
  0xae   : > { %v452_v40 = vpop.permute.xlu0 %451 }
  0xaf   : > { %461 = vst.msk [vmem:[#allocation3 + $0x38] sm:$0xff] %vm344_vm2, %v452_v40  ;;  %v337_v41 = vpop.permute.xlu1 %336 }
  0xb0   : > { %347 = vst.msk [vmem:[#allocation3 + $0x30] sm:$0xff] %vm344_vm2, %v337_v41 }
  0xb2   : > { %v485_v42 = vpop.permute.xlu0 %484  ;;  %v548_v43 = vld [vmem:[#allocation3 + $0x20] sm:$0xff] }
  0xb3   : > { %494 = vst.msk [vmem:[#allocation3 + $0x38] sm:$0xff] %vm377_vm3, %v485_v42  ;;  %v370_v44 = vpop.permute.xlu1 %369  ;;  %722 = vmatprep.mubr.bf16.mxu0 %v548_v43  ;;  %v547_v45 = vld [vmem:[#allocation3 + $0x18] sm:$0xff] }
  0xb4   : > { %380 = vst.msk [vmem:[#allocation3 + $0x30] sm:$0xff] %vm377_vm3, %v370_v44  ;;  %723 = vmatmul.mubr.bf16.gmra.mrb[4].mxu0 %v547_v45 }
  0xb6   : > { %v517_v46 = vpop.permute.xlu0 %516 }
  0xb7   : > { %526 = vst.msk [vmem:[#allocation3 + $0x38] sm:$0xff] %vm410_vm4, %v517_v46  ;;  %v403_v47 = vpop.permute.xlu1 %402 }
  0xb8   : > { %413 = vst.msk [vmem:[#allocation3 + $0x30] sm:$0xff] %vm410_vm4, %v403_v47 }
  0xba   : > { %v454_v48 = vpop.permute.xlu0 %453 }
  0xbb   : > { %462 = vst.msk [vmem:[#allocation3 + $0x50] sm:$0xff] %vm344_vm2, %v454_v48  ;;  %v339_v49 = vpop.permute.xlu1 %338 }
  0xbc   : > { %348 = vst.msk [vmem:[#allocation3 + $0x48] sm:$0xff] %vm344_vm2, %v339_v49 }
  0xbe   : > { %v487_v50 = vpop.permute.xlu0 %486  ;;  %v551_v51 = vld [vmem:[#allocation3 + $0x38] sm:$0xff] }
  0xbf   : > { %495 = vst.msk [vmem:[#allocation3 + $0x50] sm:$0xff] %vm377_vm3, %v487_v50  ;;  %v372_v52 = vpop.permute.xlu1 %371  ;;  %730 = vmatprep.mubr.bf16.mxu0 %v551_v51  ;;  %v550_v53 = vld [vmem:[#allocation3 + $0x30] sm:$0xff] }
  0xc0   : > { %381 = vst.msk [vmem:[#allocation3 + $0x48] sm:$0xff] %vm377_vm3, %v372_v52  ;;  %731 = vmatmul.mubr.bf16.gmra.mrb[8].mxu0 %v550_v53  ;;  %v1892_v52 = vld [vmem:[%s2499_s1 + $0xf8] sm:$0xff]  }
  0xc1   : > { %1739 = vmatprep.subr.bf16.mxu1 %v1892_v52 }
  0xc2   : > { %v519_v55 = vpop.permute.xlu0 %518 }
  0xc3   : > { %527 = vst.msk [vmem:[#allocation3 + $0x50] sm:$0xff] %vm410_vm4, %v519_v55  ;;  %v405_v56 = vpop.permute.xlu1 %404 }
  0xc4   : > { %414 = vst.msk [vmem:[#allocation3 + $0x48] sm:$0xff] %vm410_vm4, %v405_v56 }
  0xca   : > { %v554_v57 = vld [vmem:[#allocation3 + $0x50] sm:$0xff] }
  0xcb   : > { %738 = vmatprep.mubr.bf16.mxu0 %v554_v57  ;;  %v553_v58 = vld [vmem:[#allocation3 + $0x48] sm:$0xff]  ;;  %v1894_v57 = vld [vmem:[%s2499_s1 + $0x100] sm:$0xff]  }
  0xcc   : > { %739 = vmatmul.mubr.bf16.gmra.mrb[12].mxu0 %v553_v58  ;;  %v1895_v58 = vld [vmem:[%s2499_s1 + $0xc0] sm:$0xff]  }
 0x105   : > { %v1787_v59 = vpop.f32.mrb[0].mxu1 }
 0x106   : > { %v781_v60 = vpop.f32.mrb[1].mxu1 }
 0x107   : > { %v2268_v61 = vpop.f32.mrb[2].mxu1 }
 0x108   : > { %v784_v62 = vpop.f32.mrb[3].mxu1 }
 0x10d   : > { %v2270_v63 = vpop.f32.mrb[4].mxu1 }
 0x10e   : > { %v2272_v0 = vpop.f32.mrb[5].mxu1 }
 0x10f   : > { %v2274_v1 = vpop.f32.mrb[6].mxu1 }
 0x110   : > { %v2276_v2 = vpop.f32.mrb[7].mxu1 }
 0x17b   : > { %v1699_v10 = vpop.f32.mrb[0].mxu0 }
 0x17c   : > { %v1700_v11 = vpop.f32.mrb[1].mxu0 }
 0x17d   : > { %v1701_v13 = vadd.f32 %v1700_v11, %v1699_v10  ;;  %v1702_v14 = vpop.f32.mrb[2].mxu0 }
 0x17e   : > { %v1703_v15 = vpop.f32.mrb[3].mxu0 }
 0x17f   : > { %v1704_v17 = vadd.f32 %v1703_v15, %v1702_v14  ;;  %v717_v19 = vadd.f32 %v1701_v13, %v2299_v12 }
 0x181   : > { %v782_v20 = vadd.f32 %v781_v60, %v717_v19  ;;  %v720_v22 = vadd.f32 %v1704_v17, %v2299_v12 }
 0x183   : > { %v812_v25 = vmax.f32 %v782_v20, 0.0  ;;  %v785_v26 = vadd.f32 %v784_v62, %v720_v22 }
 0x185   : > { %820 = vst.msk [vmem:[#allocation2 + $0x11] sm:$0xff] %vm224_vm0, %v812_v25  ;;  %v813_v28 = vmax.f32 %v785_v26, 0.0 }
 0x187   : > { %821 = vst.msk [vmem:[#allocation2 + $0x21] sm:$0xff] %vm224_vm0, %v813_v28  ;;  %v1705_v31 = vpop.f32.mrb[4].mxu0 }
 0x188   : > { %v1706_v32 = vpop.f32.mrb[5].mxu0 }
 0x189   : > { %v1707_v33 = vadd.f32 %v1706_v32, %v1705_v31  ;;  %v1708_v34 = vpop.f32.mrb[6].mxu0 }
 0x18a   : > { %v1709_v35 = vpop.f32.mrb[7].mxu0 }
 0x18b   : > { %v725_v38 = vadd.f32 %v1707_v33, %v2299_v12  ;;  %v1710_v39 = vadd.f32 %v1709_v35, %v1708_v34 }
 0x18c   : > { %v884_v40 = vld [vmem:[#allocation2 + $0x11] sm:$0xff] }
 0x18d   : > { %v947_v41 = vld [vmem:[#allocation2 + $0x10] sm:$0xff]  ;;  %v790_v42 = vadd.f32 %v1787_v59, %v725_v38  ;;  %v728_v43 = vadd.f32 %v1710_v39, %v2299_v12  ;;  %v891_v44 = vpack.c.bf16 %v884_v40, %v2105_v16  ;;  %v1893_v16 = vld [vmem:[%s2499_s1 + $0xb8] sm:$0xff]  }
 0x18e   : > { %v995_v45 = vld [vmem:[#allocation2 + $0x12] sm:$0xff]  ;;  %v996_v46 = vld [vmem:[#allocation2 + $0x22] sm:$0xff]  ;;  %v875_v48 = vpack.c.bf16 %v947_v41, %v2166_v54  ;;  %1740 = vmatpush3.bf16.msra.mxu1 %v1893_v16 }
 0x18f   : > { %v885_v47 = vld [vmem:[#allocation2 + $0x21] sm:$0xff]  ;;  %v814_v49 = vmax.f32 %v790_v42, 0.0  ;;  %v793_v50 = vadd.f32 %v2268_v61, %v728_v43  ;;  %899 = vrot.lane.b32.xlu1 %v891_v44, %s1965_s12  ;;  %v1003_v51 = vpack.c.bf16 %v996_v46, %v995_v45  ;;  %v923_v55 = vpack.c.bf16 %v995_v45, %v2110_v18  ;;  %1741 = vmatprep.subr.bf16.mxu1 %v1894_v57 }
 0x190   : > { %879 = vst.msk [vmem:[#allocation3] sm:$0xff] %vm224_vm0, %v875_v48  ;;  %v987_v53 = vpack.c.bf16 %v885_v47, %v884_v40  ;;  %v948_v56 = vld [vmem:[#allocation2 + $0x20] sm:$0xff] }
 0x191   : > { %822 = vst.msk [vmem:[#allocation2 + $0x31] sm:$0xff] %vm224_vm0, %v814_v49  ;;  %v815_v54 = vmax.f32 %v793_v50, 0.0  ;;  %1011 = vrot.lane.b32.xlu0 %v1003_v51, %s1965_s12  ;;  %v955_v62 = vpack.c.bf16 %v948_v56, %v947_v41 }
 0x192   : > { %991 = vst.msk [vmem:[#allocation3 + $0x8] sm:$0xff] %vm224_vm0, %v987_v53  ;;  %1742 = vmatpush3.bf16.msra.mxu1 %v1895_v58 }
 0x193   : > { %823 = vst.msk [vmem:[#allocation2 + $0x41] sm:$0xff] %vm224_vm0, %v815_v54  ;;  %v1711_v59 = vpop.f32.mrb[8].mxu0  ;;  %931 = vrot.lane.b32.xlu1 %v923_v55, %s1966_s13  ;;  %1743 = vmatprep.subr.bf16.mxu1 %v1896_v4 }
 0x194   : > { %v1712_v60 = vpop.f32.mrb[9].mxu0 }
 0x195   : > { %v1713_v18 = vadd.f32 %v1712_v60, %v1711_v59  ;;  %v1714_v61 = vpop.f32.mrb[10].mxu0 }
 0x196   : > { %v1715_v3 = vpop.f32.mrb[11].mxu0  ;;  %1744 = vmatpush3.bf16.msra.mxu1 %v1897_v5 }
 0x197   : > { %v733_v6 = vadd.f32 %v1713_v18, %v2299_v12  ;;  %v1716_v7 = vadd.f32 %v1715_v3, %v1714_v61  ;;  %963 = vrot.lane.b32.xlu1 %v955_v62, %s1967_s23 }
 0x198   : > { %v1028_v8 = vld [vmem:[#allocation2 + $0x30] sm:$0xff] }
 0x199   : > { %v886_v10 = vld [vmem:[#allocation2 + $0x31] sm:$0xff]  ;;  %v798_v13 = vadd.f32 %v2272_v0, %v733_v6  ;;  %v736_v14 = vadd.f32 %v1716_v7, %v2299_v12  ;;  %v1035_v15 = vpack.c.bf16 %v1028_v8, %v948_v56 }
 0x19a   : > { %v918_v11 = vld [vmem:[#allocation2 + $0x32] sm:$0xff]  ;;  %v892_v17 = vpack.c.bf16 %v886_v10, %v885_v47  ;;  %v887_v20 = vld [vmem:[#allocation2 + $0x41] sm:$0xff] }
 0x19b   : > { %v924_v19 = vpack.c.bf16 %v918_v11, %v996_v46  ;;  %v816_v22 = vmax.f32 %v798_v13, 0.0  ;;  %v801_v24 = vadd.f32 %v2276_v2, %v736_v14  ;;  %1043 = vrot.lane.b32.xlu0 %v1035_v15, %s1966_s13  ;;  %880 = vst.msk [vmem:[#allocation3 + $0x18] sm:$0xff] %vm224_vm0, %v1035_v15  ;;  %v988_v25 = vpack.c.bf16 %v887_v20, %v886_v10  ;;  %v998_v26 = vld [vmem:[#allocation2 + $0x42] sm:$0xff] }
 0x19c   : > { %901 = vrot.lane.b32.xlu1 %v892_v17, %s1965_s12  ;;  %v950_v27 = vld [vmem:[#allocation2 + $0x40] sm:$0xff]  ;;  %v1004_v31 = vpack.c.bf16 %v998_v26, %v918_v11 }
 0x19d   : > { %1103 = vst.msk [vmem:[#allocation3 + $0x10] sm:$0xff] %vm224_vm0, %v924_v19  ;;  %824 = vst.msk [vmem:[#allocation2 + $0x51] sm:$0xff] %vm224_vm0, %v816_v22  ;;  %v817_v0 = vmax.f32 %v801_v24, 0.0  ;;  %v956_v32 = vpack.c.bf16 %v950_v27, %v1028_v8 }
 0x19e   : > { %992 = vst.msk [vmem:[#allocation3 + $0x20] sm:$0xff] %vm224_vm0, %v988_v25 }
 0x19f   : > { %825 = vst.msk [vmem:[#allocation2 + $0x61] sm:$0xff] %vm224_vm0, %v817_v0  ;;  %v1717_v28 = vpop.f32.mrb[12].mxu0  ;;  %1075 = vrot.lane.b32.xlu0 %v892_v17, %s1967_s23 }
 0x1a0   : > { %933 = vrot.lane.b32.xlu1 %v924_v19, %s1966_s13  ;;  %v1718_v2 = vpop.f32.mrb[13].mxu0 }
 0x1a1   : > { %v1719_v29 = vadd.f32 %v1718_v2, %v1717_v28  ;;  %v1720_v30 = vpop.f32.mrb[14].mxu0 }
 0x1a2   : > { %v1721_v33 = vpop.f32.mrb[15].mxu0 }
 0x1a3   : > { %v741_v34 = vadd.f32 %v1719_v29, %v2299_v12  ;;  %v1722_v35 = vadd.f32 %v1721_v33, %v1720_v30  ;;  %1013 = vrot.lane.b32.xlu0 %v1004_v31, %s1965_s12 }
 0x1a4   : > { %v1109_v36 = vld [vmem:[#allocation3 + $0x10] sm:$0xff]  ;;  %965 = vrot.lane.b32.xlu1 %v956_v32, %s1967_s23 }
 0x1a5   : > { %1797 = vmatprep.mubr.msk.bf16.mxu0 %vm224_vm0, %v1109_v36  ;;  %v1030_v37 = vld [vmem:[#allocation2 + $0x50] sm:$0xff]  ;;  %v806_v40 = vadd.f32 %v2270_v63, %v741_v34  ;;  %v744_v41 = vadd.f32 %v1722_v35, %v2299_v12 }
 0x1a6   : > { %v888_v38 = vld [vmem:[#allocation2 + $0x51] sm:$0xff]  ;;  %v1036_v42 = vpack.c.bf16 %v1030_v37, %v950_v27  ;;  %v889_v45 = vld [vmem:[#allocation2 + $0x61] sm:$0xff] }
 0x1a7   : > { %v920_v39 = vld [vmem:[#allocation2 + $0x52] sm:$0xff]  ;;  %v893_v43 = vpack.c.bf16 %v888_v38, %v887_v20  ;;  %v818_v46 = vmax.f32 %v806_v40, 0.0  ;;  %v809_v47 = vadd.f32 %v2274_v1, %v744_v41  ;;  %v989_v48 = vpack.c.bf16 %v889_v45, %v888_v38  ;;  %v1000_v12 = vld [vmem:[#allocation2 + $0x62] sm:$0xff] }
 0x1a8   : > { %v925_v44 = vpack.c.bf16 %v920_v39, %v998_v26  ;;  %1045 = vrot.lane.b32.xlu0 %v1036_v42, %s1966_s13  ;;  %881 = vst.msk [vmem:[#allocation3 + $0x30] sm:$0xff] %vm224_vm0, %v1036_v42  ;;  %v952_v49 = vld [vmem:[#allocation2 + $0x60] sm:$0xff]  ;;  %v1005_v1 = vpack.c.bf16 %v1000_v12, %v920_v39  ;;  %v1899_v42 = vld [vmem:[%s2501_s3 + $0x8] sm:$0xff]  }
 0x1a9   : > { %903 = vrot.lane.b32.xlu1 %v893_v43, %s1965_s12  ;;  %826 = vst.msk [vmem:[#allocation2 + $0x71] sm:$0xff] %vm224_vm0, %v818_v46  ;;  %v819_v63 = vmax.f32 %v809_v47, 0.0  ;;  %993 = vst.msk [vmem:[#allocation3 + $0x38] sm:$0xff] %vm224_vm0, %v989_v48  ;;  %v957_v50 = vpack.c.bf16 %v952_v49, %v1030_v37  ;;  %v1898_v40 = vld [vmem:[%s2501_s3] sm:$0xff]  }
 0x1aa   : > { %1104 = vst.msk [vmem:[#allocation3 + $0x28] sm:$0xff] %vm224_vm0, %v925_v44  ;;  %1805 = vmatprep.subr.bf16.mxu1 %v1898_v40 }
 0x1ab   : > { %827 = vst.msk [vmem:[#allocation2 + $0x81] sm:$0xff] %vm224_vm0, %v819_v63 }
 0x1ac   : > { %1077 = vrot.lane.b32.xlu0 %v893_v43, %s1967_s23 }
 0x1ad   : > { %935 = vrot.lane.b32.xlu1 %v925_v44, %s1966_s13 }
 0x1b0   : > { %1015 = vrot.lane.b32.xlu0 %v1005_v1, %s1965_s12  ;;  %v1032_v52 = vld [vmem:[#allocation2 + $0x70] sm:$0xff] }
 0x1b1   : > { %v1112_v51 = vld [vmem:[#allocation3 + $0x28] sm:$0xff]  ;;  %967 = vrot.lane.b32.xlu1 %v957_v50, %s1967_s23  ;;  %v890_v16 = vld [vmem:[#allocation2 + $0x71] sm:$0xff]  ;;  %v1037_v54 = vpack.c.bf16 %v1032_v52, %v952_v49  ;;  %v1646_v49 = vld [vmem:[%s2500_s2 + $0x1] ss:$0 sm:$0xff] }
 0x1b2   : > { %1798 = vmatmul.mubr.msk.bf16.vlgmr.msra.gmra.mrb[16].mxu0 %vm224_vm0, %v1112_v51  ;;  %v922_v53 = vld [vmem:[#allocation2 + $0x72] sm:$0xff]  ;;  %v894_v55 = vpack.c.bf16 %v890_v16, %v889_v45  ;;  %v1002_v57 = vld [vmem:[#allocation2 + $0x82] sm:$0xff] }
 0x1b3   : > { %v926_v56 = vpack.c.bf16 %v922_v53, %v1000_v12  ;;  %v1065_v58 = vld [vmem:[#allocation2 + $0x81] sm:$0xff]  ;;  %v1102_v59 = vpack.c.bf16 %v2207_v9, %v1002_v57  ;;  %882 = vst.msk [vmem:[#allocation3 + $0x48] sm:$0xff] %vm224_vm0, %v1037_v54  ;;  %v1006_v61 = vpack.c.bf16 %v1002_v57, %v922_v53 }
 0x1b4   : > { %1047 = vrot.lane.b32.xlu0 %v1037_v54, %s1966_s13  ;;  %v990_v60 = vpack.c.bf16 %v1065_v58, %v890_v16  ;;  %v954_v18 = vld [vmem:[#allocation2 + $0x80] sm:$0xff]  ;;  %v1070_v5 = vpack.c.bf16 %v2235_v23, %v1065_v58 }
 0x1b5   : > { %905 = vrot.lane.b32.xlu1 %v894_v55, %s1965_s12  ;;  %1105 = vst.msk [vmem:[#allocation3 + $0x40] sm:$0xff] %vm224_vm0, %v926_v56  ;;  %1106 = vst.msk [vmem:[#allocation3 + $0x58] sm:$0xff] %vm224_vm0, %v1102_v59  ;;  %v958_v3 = vpack.c.bf16 %v954_v18, %v1032_v52  ;;  %v1038_v4 = vpack.c.bf16 %v2230_v21, %v954_v18 }
 0x1b6   : > { %994 = vst.msk [vmem:[#allocation3 + $0x50] sm:$0xff] %vm224_vm0, %v990_v60 }
 0x1b8   : > { %1079 = vrot.lane.b32.xlu0 %v894_v55, %s1967_s23 }
 0x1b9   : > { %937 = vrot.lane.b32.xlu1 %v926_v56, %s1966_s13 }
 0x1bc   : > { %v1115_v62 = vld [vmem:[#allocation3 + $0x40] sm:$0xff]  ;;  %1017 = vrot.lane.b32.xlu0 %v1006_v61, %s1965_s12  ;;  %v1118_v9 = vld [vmem:[#allocation3 + $0x58] sm:$0xff]  ;;  %s1900_s12 = scalar_lea.vmem %s2453_s14, 1024 }
 0x1bd   : > { %1801 = vmatprep.mubr.msk.bf16.mxu0 %vm224_vm0, %v1115_v62  ;;  %969 = vrot.lane.b32.xlu1 %v958_v3, %s1967_s23  ;;  %p1901_p11 = scmp.ne.s32.totalorder %s2453_s14, %s1900_s12 }
 0x1be   : > { %1802 = vmatmul.mubr.msk.bf16.gmra.mrb[20].mxu0 %vm224_vm0, %v1118_v9 }
 0x1bf   : > { %p1902_p12 = pnand %p1901_p11, %p2039_p5 }
 0x1c0   : > { %1049 = vrot.lane.b32.xlu0 %v1038_v4, %s1966_s13  ;;  %s1968_s13 = smov [#allocation4]  }
 0x1c1   : > { %p1903_p13 = pneg %p1902_p12 }
 0x1c4   : > { %1081 = vrot.lane.b32.xlu0 %v1070_v5, %s1967_s23  ;;  %s1904_s23 = sshll.u32 %s1968_s13, 4  ;;  %s1905_s23 = int_to_ptr.vmem [resolvable:$false] %s1904_s23 }
 0x1c5   : > { %s1906_s25 = scalar_lea.vmem %s1905_s23, 2048  ;;  %p1907_p0 = scmp.lt.s32.totalorder %s2453_s14, %s1905_s23 }
 0x1c6   : > { %p1908_p1 = scmp.lt.s32.totalorder %s1906_s25, %s1900_s12 }
 0x1c8   : > { %p1909_p2 = por %p1908_p1, %p1907_p0 }
 0x1ca   : > { %p1910_p3 = pnand %p1909_p2, %p1903_p13 }
 0x201   : > { %v900_v6 = vpop.permute.xlu1 %899 }
 0x202   : > { %911 = vst.msk [vmem:[#allocation3] sm:$0xff] %vm344_vm2, %v900_v6 }
 0x203   : > { %v1012_v7 = vpop.permute.xlu0 %1011 }
 0x204   : > { %1023 = vst.msk [vmem:[#allocation3 + $0x8] sm:$0xff] %vm344_vm2, %v1012_v7 }
 0x205   : > { %v932_v8 = vpop.permute.xlu1 %931 }
 0x206   : > { %943 = vst.msk [vmem:[#allocation3] sm:$0xff] %vm377_vm3, %v932_v8 }
 0x209   : > { %v964_v10 = vpop.permute.xlu1 %963 }
 0x20a   : > { %975 = vst.msk [vmem:[#allocation3] sm:$0xff] %vm410_vm4, %v964_v10 }
 0x20d   : > { %v1044_v11 = vpop.permute.xlu0 %1043 }
 0x20e   : > { %v902_v21 = vpop.permute.xlu1 %901  ;;  %1055 = vst.msk [vmem:[#allocation3 + $0x8] sm:$0xff] %vm377_vm3, %v1044_v11 }
 0x20f   : > { %912 = vst.msk [vmem:[#allocation3 + $0x18] sm:$0xff] %vm344_vm2, %v902_v21 }
 0x211   : > { %v1076_v23 = vpop.permute.xlu0 %1075  ;;  %v1107_v22 = vld [vmem:[#allocation3] sm:$0xff] }
 0x212   : > { %v934_v13 = vpop.permute.xlu1 %933  ;;  %1087 = vst.msk [vmem:[#allocation3 + $0x8] sm:$0xff] %vm410_vm4, %v1076_v23 }
 0x213   : > { %944 = vst.msk [vmem:[#allocation3 + $0x18] sm:$0xff] %vm377_vm3, %v934_v13 }
 0x215   : > { %v1014_v14 = vpop.permute.xlu0 %1013 }
 0x216   : > { %v966_v15 = vpop.permute.xlu1 %965  ;;  %1024 = vst.msk [vmem:[#allocation3 + $0x20] sm:$0xff] %vm344_vm2, %v1014_v14 }
 0x217   : > { %976 = vst.msk [vmem:[#allocation3 + $0x18] sm:$0xff] %vm410_vm4, %v966_v15 }
 0x219   : > { %v1108_v20 = vld [vmem:[#allocation3 + $0x8] sm:$0xff] }
 0x21a   : > { %v1046_v17 = vpop.permute.xlu0 %1045  ;;  %1277 = vmatprep.mubr.bf16.mxu1 %v1108_v20 }
 0x21b   : > { %v904_v19 = vpop.permute.xlu1 %903  ;;  %1056 = vst.msk [vmem:[#allocation3 + $0x20] sm:$0xff] %vm377_vm3, %v1046_v17  ;;  %1278 = vmatmul.mubr.bf16.vlgmr.msra.gmra.mrb[8].mxu1 %v1107_v22 }
 0x21c   : > { %913 = vst.msk [vmem:[#allocation3 + $0x30] sm:$0xff] %vm344_vm2, %v904_v19  ;;  %1806 = vmatpush3.bf16.msra.mxu1 %v1898_v40 }
 0x21d   : > { %1807 = vmatprep.subr.bf16.mxu1 %v1899_v42 }
 0x21e   : > { %v1078_v24 = vpop.permute.xlu0 %1077  ;;  %v1110_v29 = vld [vmem:[#allocation3 + $0x18] sm:$0xff] }
 0x21f   : > { %v936_v25 = vpop.permute.xlu1 %935  ;;  %1088 = vst.msk [vmem:[#allocation3 + $0x20] sm:$0xff] %vm410_vm4, %v1078_v24 }
 0x220   : > { %945 = vst.msk [vmem:[#allocation3 + $0x30] sm:$0xff] %vm377_vm3, %v936_v25  ;;  %1808 = vmatpush3.bf16.msra.mxu1 %v1899_v42 }
 0x222   : > { %v1016_v0 = vpop.permute.xlu0 %1015 }
 0x223   : > { %v968_v26 = vpop.permute.xlu1 %967  ;;  %1025 = vst.msk [vmem:[#allocation3 + $0x38] sm:$0xff] %vm344_vm2, %v1016_v0 }
 0x224   : > { %977 = vst.msk [vmem:[#allocation3 + $0x30] sm:$0xff] %vm410_vm4, %v968_v26 }
 0x226   : > { %v1048_v27 = vpop.permute.xlu0 %1047  ;;  %v1111_v2 = vld [vmem:[#allocation3 + $0x20] sm:$0xff] }
 0x227   : > { %v906_v28 = vpop.permute.xlu1 %905  ;;  %1057 = vst.msk [vmem:[#allocation3 + $0x38] sm:$0xff] %vm377_vm3, %v1048_v27  ;;  %1285 = vmatprep.mubr.bf16.mxu1 %v1111_v2 }
 0x228   : > { %914 = vst.msk [vmem:[#allocation3 + $0x48] sm:$0xff] %vm344_vm2, %v906_v28  ;;  %1286 = vmatmul.mubr.bf16.gmra.mrb[12].mxu1 %v1110_v29 }
 0x22a   : > { %v1080_v30 = vpop.permute.xlu0 %1079 }
 0x22b   : > { %v938_v31 = vpop.permute.xlu1 %937  ;;  %1089 = vst.msk [vmem:[#allocation3 + $0x38] sm:$0xff] %vm410_vm4, %v1080_v30  ;;  %v1113_v36 = vld [vmem:[#allocation3 + $0x30] sm:$0xff] }
 0x22c   : > { %946 = vst.msk [vmem:[#allocation3 + $0x48] sm:$0xff] %vm377_vm3, %v938_v31 }
 0x22e   : > { %v1018_v32 = vpop.permute.xlu0 %1017 }
 0x22f   : > { %1026 = vst.msk [vmem:[#allocation3 + $0x50] sm:$0xff] %vm344_vm2, %v1018_v32  ;;  %v970_v33 = vpop.permute.xlu1 %969 }
 0x230   : > { %978 = vst.msk [vmem:[#allocation3 + $0x48] sm:$0xff] %vm410_vm4, %v970_v33 }
 0x232   : > { %v1050_v34 = vpop.permute.xlu0 %1049  ;;  %v1114_v35 = vld [vmem:[#allocation3 + $0x38] sm:$0xff] }
 0x233   : > { %1058 = vst.msk [vmem:[#allocation3 + $0x50] sm:$0xff] %vm377_vm3, %v1050_v34  ;;  %1293 = vmatprep.mubr.bf16.mxu1 %v1114_v35 }
 0x234   : > { %1294 = vmatmul.mubr.bf16.gmra.mrb[16].mxu1 %v1113_v36 }
 0x236   : > { %v1082_v37 = vpop.permute.xlu0 %1081 }
 0x237   : > { %1090 = vst.msk [vmem:[#allocation3 + $0x50] sm:$0xff] %vm410_vm4, %v1082_v37  ;;  %v1116_v39 = vld [vmem:[#allocation3 + $0x48] sm:$0xff] }
 0x23e   : > { %v1117_v38 = vld [vmem:[#allocation3 + $0x50] sm:$0xff] }
 0x23f   : > { %1301 = vmatprep.mubr.bf16.mxu1 %v1117_v38 }
 0x240   : > { %1302 = vmatmul.mubr.bf16.gmra.mrb[20].mxu1 %v1116_v39  ;;  %v1669_v39 = vld [vmem:[%s2502_s4] ss:$0 sm:$0xff] }
 0x285   : > { %v1799_v41 = vpop.f32.mrb[16].mxu0 }
 0x286   : > { %v1344_v43 = vpop.f32.mrb[17].mxu0 }
 0x287   : > { %v1800_v44 = vpop.f32.mrb[18].mxu0 }
 0x288   : > { %v1347_v45 = vpop.f32.mrb[19].mxu0 }
 0x291   : > { %v1803_v46 = vpop.f32.mrb[20].mxu0 }
 0x292   : > { %v1360_v47 = vpop.f32.mrb[21].mxu0 }
 0x293   : > { %v1804_v48 = vpop.f32.mrb[22].mxu0 }
 0x294   : > { %v1363_v63 = vpop.f32.mrb[23].mxu0 }
 0x2ee   : > { %v1745_v12 = vpop.f32.mrb[8].mxu1 }
 0x2ef   : > { %v1746_v1 = vpop.f32.mrb[9].mxu1 }
 0x2f0   : > { %v1747_v50 = vadd.f32 %v1746_v1, %v1745_v12  ;;  %v1748_v51 = vpop.f32.mrb[10].mxu1 }
 0x2f1   : > { %v1749_v52 = vpop.f32.mrb[11].mxu1 }
 0x2f2   : > { %v1280_v16 = vadd.f32 %v1747_v50, %v1646_v49  ;;  %v1750_v53 = vadd.f32 %v1749_v52, %v1748_v51 }
 0x2f4   : > { %v1345_v54 = vadd.f32 %v1344_v43, %v1280_v16  ;;  %v1283_v55 = vadd.f32 %v1750_v53, %v1646_v49 }
 0x2f6   : > { %v1348_v56 = vadd.f32 %v1347_v45, %v1283_v55  ;;  %v1375_v57 = vmax.f32 %v1345_v54, 0.0 }
 0x2f8   : > { %v1376_v58 = vmax.f32 %v1348_v56, 0.0 }
 0x2fa   : > { %v1383_v59 = vpack.c.bf16 %v1376_v58, %v1375_v57 }
 0x2fb   : > { %v1751_v60 = vpop.f32.mrb[12].mxu1 }
 0x2fc   : > { %v1752_v18 = vpop.f32.mrb[13].mxu1  ;;  %1809 = vmatprep.mubr.msk.bf16.mxu1 %vm224_vm0, %v1383_v59 }
 0x2fd   : > { %v1753_v61 = vadd.f32 %v1752_v18, %v1751_v60  ;;  %v1754_v62 = vpop.f32.mrb[14].mxu1 }
 0x2fe   : > { %v1755_v3 = vpop.f32.mrb[15].mxu1 }
 0x2ff   : > { %v1288_v9 = vadd.f32 %v1753_v61, %v1646_v49  ;;  %v1756_v4 = vadd.f32 %v1755_v3, %v1754_v62 }
 0x301   : > { %v1353_v5 = vadd.f32 %v1799_v41, %v1288_v9  ;;  %v1291_v6 = vadd.f32 %v1756_v4, %v1646_v49 }
 0x303   : > { %v1356_v7 = vadd.f32 %v1800_v44, %v1291_v6  ;;  %v1377_v8 = vmax.f32 %v1353_v5, 0.0 }
 0x305   : > { %v1378_v10 = vmax.f32 %v1356_v7, 0.0 }
 0x307   : > { %v1384_v11 = vpack.c.bf16 %v1378_v10, %v1377_v8  ;;  %v1757_v21 = vpop.f32.mrb[16].mxu1 }
 0x308   : > { %v1758_v23 = vpop.f32.mrb[17].mxu1 }
 0x309   : > { %v1759_v13 = vadd.f32 %v1758_v23, %v1757_v21  ;;  %v1760_v14 = vpop.f32.mrb[18].mxu1  ;;  %1810 = vmatmul.mubr.msk.bf16.vlgmr.msra.gmra.mrb[24].mxu1 %vm224_vm0, %v1384_v11 }
 0x30a   : > { %v1761_v15 = vpop.f32.mrb[19].mxu1 }
 0x30b   : > { %v1296_v17 = vadd.f32 %v1759_v13, %v1646_v49  ;;  %v1762_v19 = vadd.f32 %v1761_v15, %v1760_v14 }
 0x30d   : > { %v1361_v20 = vadd.f32 %v1360_v47, %v1296_v17  ;;  %v1299_v22 = vadd.f32 %v1762_v19, %v1646_v49 }
 0x30f   : > { %v1364_v24 = vadd.f32 %v1363_v63, %v1299_v22  ;;  %v1379_v25 = vmax.f32 %v1361_v20, 0.0 }
 0x311   : > { %v1380_v0 = vmax.f32 %v1364_v24, 0.0 }
 0x313   : > { %v1385_v26 = vpack.c.bf16 %v1380_v0, %v1379_v25  ;;  %v1763_v27 = vpop.f32.mrb[20].mxu1 }
 0x314   : > { %v1764_v28 = vpop.f32.mrb[21].mxu1 }
 0x315   : > { %v1765_v2 = vadd.f32 %v1764_v28, %v1763_v27  ;;  %v1766_v29 = vpop.f32.mrb[22].mxu1  ;;  %1813 = vmatprep.mubr.msk.bf16.mxu1 %vm224_vm0, %v1385_v26 }
 0x316   : > { %v1767_v30 = vpop.f32.mrb[23].mxu1 }
 0x317   : > { %v1304_v31 = vadd.f32 %v1765_v2, %v1646_v49  ;;  %v1768_v32 = vadd.f32 %v1767_v30, %v1766_v29 }
 0x319   : > { %v1369_v33 = vadd.f32 %v1803_v46, %v1304_v31  ;;  %v1307_v34 = vadd.f32 %v1768_v32, %v1646_v49 }
 0x31b   : > { %v1372_v35 = vadd.f32 %v1804_v48, %v1307_v34  ;;  %v1381_v36 = vmax.f32 %v1369_v33, 0.0 }
 0x31d   : > { %v1382_v37 = vmax.f32 %v1372_v35, 0.0 }
 0x31f   : > { %v1386_v38 = vpack.c.bf16 %v1382_v37, %v1381_v36 }
 0x321   : > { %1814 = vmatmul.mubr.msk.bf16.gmra.mrb[28].mxu1 %vm224_vm0, %v1386_v38 }
 0x3dc   : > { %v1811_v40 = vpop.f32.mrb[24].mxu1 }
 0x3dd   : > { %v1465_v41 = vadd.f32 %v1811_v40, %v1669_v39  ;;  %v1456_v42 = vpop.f32.mrb[25].mxu1 }
 0x3de   : > { %v1457_v43 = vadd.f32 %v1669_v39, %v1456_v42  ;;  %v1812_v44 = vpop.f32.mrb[26].mxu1 }
 0x3df   : > { %v1489_v45 = vmax.f32 %v1465_v41, 0.0  ;;  %v1468_v46 = vadd.f32 %v1812_v44, %v1669_v39  ;;  %v1459_v47 = vpop.f32.mrb[27].mxu1 }
 0x3e0   : > { %v1487_v48 = vmax.f32 %v1457_v43, 0.0  ;;  %v1460_v63 = vadd.f32 %v1669_v39, %v1459_v47 }
 0x3e1   : > { %1497 = vst [vmem:[%s217_s10 + $0x10] sm:$0xff] %v1489_v45  ;;  %v1490_v12 = vmax.f32 %v1468_v46, 0.0 }
 0x3e2   : > { %1495 = vst [vmem:[%s217_s10] sm:$0xff] %v1487_v48  ;;  %v1488_v49 = vmax.f32 %v1460_v63, 0.0 }
 0x3e3   : > { %1498 = vst [vmem:[%s217_s10 + $0x18] sm:$0xff] %v1490_v12 }
 0x3e4   : > { %1496 = vst [vmem:[%s217_s10 + $0x8] sm:$0xff] %v1488_v49 }
 0x3f4   : > { %v1815_v1 = vpop.f32.mrb[28].mxu1 }
 0x3f5   : > { %v1481_v50 = vadd.f32 %v1815_v1, %v1669_v39  ;;  %v1472_v51 = vpop.f32.mrb[29].mxu1 }
 0x3f6   : > { %v1473_v52 = vadd.f32 %v1669_v39, %v1472_v51  ;;  %v1816_v16 = vpop.f32.mrb[30].mxu1 }
 0x3f7   : > { %v1493_v53 = vmax.f32 %v1481_v50, 0.0  ;;  %v1484_v54 = vadd.f32 %v1816_v16, %v1669_v39  ;;  %v1475_v55 = vpop.f32.mrb[31].mxu1 }
 0x3f8   : > { %v1491_v56 = vmax.f32 %v1473_v52, 0.0  ;;  %v1476_v57 = vadd.f32 %v1669_v39, %v1475_v55 }
 0x3f9   : > { %1501 = vst [vmem:[%s217_s10 + $0x30] sm:$0xff] %v1493_v53  ;;  %v1494_v58 = vmax.f32 %v1484_v54, 0.0 }
 0x3fa   : > { %1499 = vst [vmem:[%s217_s10 + $0x20] sm:$0xff] %v1491_v56  ;;  %v1492_v59 = vmax.f32 %v1476_v57, 0.0 }
 0x3fb   : > { %1502 = vst [vmem:[%s217_s10 + $0x38] sm:$0xff] %v1494_v58 }
 0x3fc   : > { %1500 = vst [vmem:[%s217_s10 + $0x28] sm:$0xff] %v1492_v59 }
 0x3fd   : > { %1913 = shalt.err (!%p1910_p3)
}
 0x3fe   : > { %s1914_s26 = scalar_lea.hbm %s2451_s17, 1024  ;;  %s1918_s7 = scalar_lea.hbm %s2503_s5, 2048 }
 0x3ff   : > { %p1915_p4 = scmp.ne.s32.totalorder %s2451_s17, %s1914_s26  ;;  %p1919_p9 = scmp.lt.u32.totalorder %s2451_s17, %s2503_s5 }
 0x400   : > { %p1920_p10 = scmp.lt.u32.totalorder %s1918_s7, %s1914_s26  ;;  %p1922_p12 = scmp.lt.u32.totalorder %s1914_s26, %s2451_s17 }
 0x401   : > { %p1916_p7 = pnand %p1915_p4, %p2039_p5 }
 0x402   : > { %p1921_p11 = por %p1920_p10, %p1919_p9 }
 0x403   : > { %p1917_p8 = pneg %p1916_p7 }
 0x404   : > { %p1923_p13 = por %p1922_p12, %p1921_p11 }
 0x406   : > { %p1924_p0 = pnand %p1923_p13, %p1917_p8 }
 0x408   : > { %1927 = shalt.err (!%p1924_p0)
}
 0x409   : > { %s1969_s10 = smov 128   ;;  %s1970_s11 = smov 8  }
 0x40a   : > { %1817 = dma.vmem_to_hbm [thread:$0]  (%p2039_p5), %s2453_s14, 1024, %s2451_s17, %s2457_s22, %s1969_s10, %s1969_s10, %s1970_s11  }
 0x40b PF: > { %p1823_p1 = scmp.ge.s32.totalorder %s1962_s21, 2  ;;  %s1532_s15 = sand.u32 1, %s1950_s18  }
 0x40c   : > { %s1533_s16 = scalar_lea.sflag [#allocation5], %s1532_s15 }
 0x40d   : > { %p1820_p2 = pnand %p1823_p1, %p2043_p6 }
 0x40f   : > { %1945 = dma.done.wait (!%p1820_p2), %s1533_s16, 1024  }
 0x410   : > { %1947 = vsyncadd (!%p1820_p2), %s1533_s16, 4294966272  ;;  %p15_p3 = scmp.ge.s32.totalorder %s2026_s24, 4   ;;  %s2506_s18 = smov %s1954_s19 }
 0x411   : > { %s2507_s19 = smov %s1958_s20  ;;  %s2508_s20 = smov %s2037_s27 }
 0x412   : > { %s2509_s21 = smov %s2026_s24  ;;  %17 = sbr.rel (!%p15_p3) target bundleno = 3 (0x3), region = 79 }
 0x419   :  { %1538 = vsyncpa [#allocation5], 1 }
 0x41a   :  { %1540 = vsyncpa [#allocation5 + $0x1], 1 }

</bundles_post_ra>
